<compile_context>
chip_gen: v7x
topology: tpu7x:2x2x1
jax: 0.10.0
libtpu: 0.0.40
codegen_flags: <defaults>
</compile_context>

<pallas_src>
import functools
import math

import jax
import jax.numpy as jnp
from jax import lax
from jax.experimental import pallas as pl
from jax.experimental.pallas import tpu as pltpu

_INV_SQRT2 = 1.0 / math.sqrt(2.0)


def _round_up(x, m):
    return -(-x // m) * m


def _gelu(h, approximate):
    if approximate:
        # tanh approximation -> EUP slot (free when the kernel is VALU-bound).
        return jax.nn.gelu(h, approximate=True)
    # Exact (erf-based) GeLU: matches torch.nn.GELU default semantics.
    return 0.5 * h * (1.0 + lax.erf(h * _INV_SQRT2))


def _ffn_resident_kernel(x_ref, w1_ref, w2_ref, o_ref, *, approximate):
    # x_ref : (TM, D_MODEL)        compute dtype
    # w1_ref: (D_MODEL, D_FF)      compute dtype, whole array VMEM-resident
    # w2_ref: (D_FF, D_MODEL)      compute dtype, whole array VMEM-resident
    h = jnp.dot(x_ref[...], w1_ref[...], preferred_element_type=jnp.float32)
    # Fused GeLU + downcast feeding the second dot: one f32 temp live.
    g = _gelu(h, approximate).astype(w2_ref.dtype)
    o_ref[...] = jnp.dot(g, w2_ref[...],
                         preferred_element_type=jnp.float32).astype(o_ref.dtype)


def _ffn_chunked_kernel(x_ref, w1_ref, w2_ref, o_ref, acc_ref, *, approximate):
    # grid = (token tiles, d_ff chunks); d_ff is the reduction axis (last, "arbitrary").
    # x_ref : (TM, D_MODEL); w1_ref: (D_MODEL, TK_FF); w2_ref: (TK_FF, D_MODEL)
    k = pl.program_id(1)

    @pl.when(k == 0)
    def _():
        acc_ref[...] = jnp.zeros_like(acc_ref)

    h = jnp.dot(x_ref[...], w1_ref[...], preferred_element_type=jnp.float32)
    g = _gelu(h, approximate).astype(w2_ref.dtype)
    acc_ref[...] += jnp.dot(g, w2_ref[...], preferred_element_type=jnp.float32)

    @pl.when(k == pl.num_programs(1) - 1)
    def _():
        o_ref[...] = acc_ref[...].astype(o_ref.dtype)


def _device_vmem_bytes():
    try:
        return int(pltpu.get_tpu_info().vmem_capacity_bytes)
    except Exception:
        return 64 * 1024 * 1024   # conservative: v7x per-TensorCore VMEM


def ffn_pallas(x, w1, w2, *, tm=256, compute_dtype=jnp.bfloat16,
               approximate_gelu=False, force_chunked=False, tk_ff=None):
    """out = GeLU(x @ w1.T) @ w2.T fused in one Pallas TPU kernel.

    x: (S, D_MODEL); w1: (D_FF, D_MODEL); w2: (D_MODEL, D_FF).
    compute_dtype: dtype fed to the MXU (bf16 default; jnp.float32 for exact
    math). Accumulation and GeLU are always f32; output keeps x.dtype.
    """
    S, d_model = x.shape
    d_ff, d_model_w1 = w1.shape
    assert d_model_w1 == d_model, "W1 must be (D_FF, D_MODEL)"
    assert w2.shape == (d_model, d_ff), "W2 must be (D_MODEL, D_FF)"

    out_dtype = x.dtype
    cdt = jnp.dtype(compute_dtype) if compute_dtype is not None else jnp.dtype(x.dtype)
    c_bytes = cdt.itemsize
    o_bytes = jnp.dtype(out_dtype).itemsize

    # Pre-transpose once in the wrapper (one-time XLA op, fused with the cast)
    # so both in-kernel matmuls are standard contractions -> no in-kernel
    # relayout of the weights. Skip the cast if weights already carry cdt.
    xc = x if x.dtype == cdt else x.astype(cdt)
    w1t = w1.T if w1.dtype == cdt else w1.T.astype(cdt)   # (D_MODEL, D_FF)
    w2t = w2.T if w2.dtype == cdt else w2.T.astype(cdt)   # (D_FF, D_MODEL)

    # Token tile: dtype-aware row alignment (sub-32-bit dtypes pack sublanes),
    # clamped by rounding S UP (not down) so ragged S costs <= align-1 pad rows.
    row_align = max(8, 32 // c_bytes)                 # 8 f32, 16 bf16, 32 int8
    tm = _round_up(max(1, min(tm, S)), row_align)
    n_tok = -(-S // tm)
    s_pad = n_tok * tm
    if s_pad != S:
        # Zero padding is exact: GeLU(0) = 0, padded rows sliced off below.
        xc = jnp.pad(xc, ((0, s_pad - S), (0, 0)))

    vmem_cap = _device_vmem_bytes()
    budget = max(vmem_cap - 16 * 1024 * 1024, 16 * 1024 * 1024)
    slack = 2 * 1024 * 1024

    # Resident-weight estimate: weights single-buffered, x/out double-buffered,
    # one f32 intermediate + its cdt downcast.
    resident_est = (2 * d_model * d_ff * c_bytes
                    + 2 * tm * d_model * (c_bytes + o_bytes)
                    + tm * d_ff * (4 + c_bytes)
                    + slack)
    use_chunked = force_chunked or resident_est > budget

    cost = pl.CostEstimate(
        flops=4 * s_pad * d_model * d_ff,                    # two matmuls
        transcendentals=s_pad * d_ff,                        # erf/tanh per h elem
        bytes_accessed=(s_pad * d_model * c_bytes            # x
                        + 2 * d_model * d_ff * c_bytes       # W1 + W2
                        + s_pad * d_model * o_bytes),        # out
    )

    if not use_chunked:
        vmem_limit = int(min(max(resident_est, 32 * 1024 * 1024), budget))
        out = pl.pallas_call(
            functools.partial(_ffn_resident_kernel, approximate=approximate_gelu),
            out_shape=jax.ShapeDtypeStruct((s_pad, d_model), out_dtype),
            grid_spec=pltpu.PrefetchScalarGridSpec(
                num_scalar_prefetch=0,
                grid=(n_tok,),
                in_specs=[
                    # x: tiled over tokens, auto-pipelined.
                    pl.BlockSpec((tm, d_model), lambda i: (i, 0)),
                    # W1t / W2t: whole arrays resident in VMEM, single-buffered.
                    pl.BlockSpec(memory_space=pltpu.MemorySpace.VMEM),
                    pl.BlockSpec(memory_space=pltpu.MemorySpace.VMEM),
                ],
                out_specs=pl.BlockSpec((tm, d_model), lambda i: (i, 0)),
            ),
            compiler_params=pltpu.CompilerParams(
                dimension_semantics=("parallel",),    # token tiles across TCs
                vmem_limit_bytes=vmem_limit,
            ),
            cost_estimate=cost,
        )(xc, w1t, w2t)
    else:
        # --- d_ff-chunked accumulator path (P3): stream W1/W2 blocks. ---
        ff_align = 256   # v6e/v7x MXU is 2x256x256; also fine on v5e (4x128x128)
        if tk_ff is None:
            def chunk_est(t):
                return (4 * d_model * t * c_bytes                 # W1+W2 blocks, 2x buffered
                        + 2 * tm * d_model * (c_bytes + o_bytes)  # x/out tiles
                        + tm * d_model * 4                        # f32 accumulator
                        + tm * t * (4 + c_bytes)                  # h (f32) + g (cdt)
                        + slack)
            tk_ff = min(_round_up(d_ff, ff_align), 4096)
            while tk_ff > ff_align and chunk_est(tk_ff) > budget:
                tk_ff //= 2
            tk_ff = max(_round_up(tk_ff, ff_align), ff_align)
        else:
            tk_ff = max(_round_up(tk_ff, 128), 128)

        dff_pad = _round_up(d_ff, tk_ff)
        if dff_pad != d_ff:
            # Zero d_ff padding is exact: GeLU(0)=0 and padded W2 rows are 0.
            w1t = jnp.pad(w1t, ((0, 0), (0, dff_pad - d_ff)))
            w2t = jnp.pad(w2t, ((0, dff_pad - d_ff), (0, 0)))
        n_ff = dff_pad // tk_ff

        chunk_vmem = (4 * d_model * tk_ff * c_bytes
                      + 2 * tm * d_model * (c_bytes + o_bytes)
                      + tm * d_model * 4
                      + tm * tk_ff * (4 + c_bytes)
                      + slack)
        vmem_limit = int(min(max(chunk_vmem, 32 * 1024 * 1024), budget))

        out = pl.pallas_call(
            functools.partial(_ffn_chunked_kernel, approximate=approximate_gelu),
            out_shape=jax.ShapeDtypeStruct((s_pad, d_model), out_dtype),
            grid_spec=pltpu.PrefetchScalarGridSpec(
                num_scalar_prefetch=0,
                grid=(n_tok, n_ff),
                in_specs=[
                    # x tile is constant over the d_ff axis -> not re-fetched.
                    pl.BlockSpec((tm, d_model), lambda i, k: (i, 0)),
                    pl.BlockSpec((d_model, tk_ff), lambda i, k: (0, k)),
                    pl.BlockSpec((tk_ff, d_model), lambda i, k: (k, 0)),
                ],
                out_specs=pl.BlockSpec((tm, d_model), lambda i, k: (i, 0)),
                scratch_shapes=[pltpu.VMEM((tm, d_model), jnp.float32)],
            ),
            compiler_params=pltpu.CompilerParams(
                dimension_semantics=("parallel", "arbitrary"),
                vmem_limit_bytes=vmem_limit,
            ),
            cost_estimate=cost,
        )(xc, w1t, w2t)

    if s_pad != S:
        out = out[:S]
    return out


def ffn_ref(x, w1, w2, approximate=False):
    h = x @ w1.T
    if approximate:
        g = jax.nn.gelu(h, approximate=True)
    else:
        g = 0.5 * h * (1.0 + lax.erf(h * _INV_SQRT2))
    return g @ w2.T


if __name__ == "__main__":
    # Small but lane-dense shapes: S=512 tokens, d_model=128, d_ff=512.
    S, D_MODEL, D_FF = 512, 128, 512

    key = jax.random.PRNGKey(0)
    kx, k1, k2 = jax.random.split(key, 3)
    x = jax.random.normal(kx, (S, D_MODEL), dtype=jnp.float32)
    # Deterministic synthetic parameters (no checkpoint load).
    w1 = jax.random.normal(k1, (D_FF, D_MODEL), dtype=jnp.float32) * 0.02
    w2 = jax.random.normal(k2, (D_MODEL, D_FF), dtype=jnp.float32) * 0.02

    ref = ffn_ref(x, w1, w2)

    # 1) Exact-math resident path (f32 on the MXU): tight check.
    out_f32 = ffn_pallas(x, w1, w2, compute_dtype=jnp.float32)
    jax.block_until_ready(out_f32)
    assert out_f32.shape == (S, D_MODEL)
    assert jnp.allclose(out_f32, ref, atol=1e-4, rtol=1e-4), "f32 resident mismatch"

    # 2) Fast path (bf16 MXU, f32 accumulation + f32 GeLU): loose check.
    out_bf16 = ffn_pallas(x, w1, w2)  # compute_dtype=bf16 default
    jax.block_until_ready(out_bf16)
    assert out_bf16.shape == (S, D_MODEL)
    assert jnp.allclose(out_bf16, ref, atol=1e-2, rtol=5e-2), "bf16 resident mismatch"

    # 3) d_ff-chunked accumulator path (forced, 2 chunks of 256): tight check.
    out_chunk = ffn_pallas(x, w1, w2, compute_dtype=jnp.float32,
                           force_chunked=True, tk_ff=256)
    jax.block_until_ready(out_chunk)
    assert jnp.allclose(out_chunk, ref, atol=1e-4, rtol=1e-4), "chunked mismatch"

    # 4) Ragged S and ragged d_ff chunk (tests the padding paths): tight check.
    S2 = 250
    x2 = x[:S2]
    ref2 = ffn_ref(x2, w1, w2)
    out_ragged = ffn_pallas(x2, w1, w2, compute_dtype=jnp.float32,
                            force_chunked=True, tk_ff=384)
    jax.block_until_ready(out_ragged)
    assert out_ragged.shape == (S2, D_MODEL)
    assert jnp.allclose(out_ragged, ref2, atol=1e-4, rtol=1e-4), "ragged mismatch"

    # 5) tanh-approximate GeLU path (EUP), checked against a tanh reference.
    ref_tanh = ffn_ref(x, w1, w2, approximate=True)
    out_tanh = ffn_pallas(x, w1, w2, compute_dtype=jnp.float32,
                          approximate_gelu=True)
    jax.block_until_ready(out_tanh)
    assert jnp.allclose(out_tanh, ref_tanh, atol=1e-4, rtol=1e-4), "tanh-gelu mismatch"

    print("KERNEL_OK")
</pallas_src>

<mosaic_0001>
module attributes {stable_mosaic.version = 11 : i64} {
  func.func @_ffn_resident_kernel(%arg0: i32, %arg1: memref<256x128xf32, #tpu.memory_space<vmem>>, %arg2: memref<128x512xf32, #tpu.memory_space<vmem>>, %arg3: memref<512x128xf32, #tpu.memory_space<vmem>>, %arg4: memref<256x128xf32, #tpu.memory_space<vmem>>) attributes {dimension_semantics = [#tpu.dimension_semantics<parallel>], iteration_bounds = array<i64: 2>, scalar_prefetch = 0 : i64, scratch_operands = 0 : i64, tpu.core_type = #tpu.core_type<tc>, window_params = [{transform_indices = @transform_0, window_bounds = array<i64: 256, 128>}, {pipeline_mode = #tpu.pipeline_mode<synchronous>, transform_indices = @transform_1, window_bounds = array<i64: 128, 512>}, {pipeline_mode = #tpu.pipeline_mode<synchronous>, transform_indices = @transform_2, window_bounds = array<i64: 512, 128>}, {transform_indices = @transform_3, window_bounds = array<i64: 256, 128>}]} {
    %c0 = arith.constant 0 : index
    %c0_0 = arith.constant 0 : index
    %0 = vector.load %arg1[%c0, %c0_0] : memref<256x128xf32, #tpu.memory_space<vmem>>, vector<256x128xf32>
    %c0_1 = arith.constant 0 : index
    %c0_2 = arith.constant 0 : index
    %1 = vector.load %arg2[%c0_1, %c0_2] : memref<128x512xf32, #tpu.memory_space<vmem>>, vector<128x512xf32>
    %cst = arith.constant dense<0.000000e+00> : vector<256x512xf32>
    %2 = tpu.matmul %0, %1, %cst {dimension_numbers = #tpu.dot_dimension_numbers<[1], [0], [0], [1], [0, 0, 1, 1], [], []>} : vector<256x128xf32>, vector<128x512xf32>, vector<256x512xf32> -> vector<256x512xf32>
    %cst_3 = arith.constant 5.000000e-01 : f32
    %3 = vector.broadcast %cst_3 : f32 to vector<256x512xf32>
    %4 = arith.mulf %3, %2 : vector<256x512xf32>
    %cst_4 = arith.constant 0.707106769 : f32
    %5 = vector.broadcast %cst_4 : f32 to vector<256x512xf32>
    %6 = arith.mulf %2, %5 : vector<256x512xf32>
    %7 = math.erf %6 : vector<256x512xf32>
    %cst_5 = arith.constant 1.000000e+00 : f32
    %8 = vector.broadcast %cst_5 : f32 to vector<256x512xf32>
    %9 = arith.addf %8, %7 : vector<256x512xf32>
    %10 = arith.mulf %4, %9 : vector<256x512xf32>
    %c0_6 = arith.constant 0 : index
    %c0_7 = arith.constant 0 : index
    %11 = vector.load %arg3[%c0_6, %c0_7] : memref<512x128xf32, #tpu.memory_space<vmem>>, vector<512x128xf32>
    %cst_8 = arith.constant dense<0.000000e+00> : vector<256x128xf32>
    %12 = tpu.matmul %10, %11, %cst_8 {dimension_numbers = #tpu.dot_dimension_numbers<[1], [0], [0], [1], [0, 0, 1, 1], [], []>} : vector<256x512xf32>, vector<512x128xf32>, vector<256x128xf32> -> vector<256x128xf32>
    %c0_9 = arith.constant 0 : index
    %c0_10 = arith.constant 0 : index
    %13 = vector.load %arg4[%c0_9, %c0_10] : memref<256x128xf32, #tpu.memory_space<vmem>>, vector<256x128xf32>
    tpu.vector_store %arg4[%c0_9, %c0_10], %12 {strides = array<i32>} : memref<256x128xf32, #tpu.memory_space<vmem>>, vector<256x128xf32>,
    return
  }
  func.func @transform_0(%arg0: i32) -> (i32, i32) {
    %c0_i32 = arith.constant 0 : i32
    %c0_i32_0 = arith.constant 0 : i32
    return %arg0, %c0_i32 : i32, i32
  }
  func.func @transform_1(%arg0: i32) -> (i32, i32) {
    %c0_i32 = arith.constant 0 : i32
    %c0_i32_0 = arith.constant 0 : i32
    %c0_i32_1 = arith.constant 0 : i32
    return %c0_i32, %c0_i32_0 : i32, i32
  }
  func.func @transform_2(%arg0: i32) -> (i32, i32) {
    %c0_i32 = arith.constant 0 : i32
    %c0_i32_0 = arith.constant 0 : i32
    %c0_i32_1 = arith.constant 0 : i32
    return %c0_i32, %c0_i32_0 : i32, i32
  }
  func.func @transform_3(%arg0: i32) -> (i32, i32) {
    %c0_i32 = arith.constant 0 : i32
    %c0_i32_0 = arith.constant 0 : i32
    return %arg0, %c0_i32 : i32, i32
  }
}

</mosaic_0001>

<bundles_post_ra>
// kernel: tpu_custom_call.1
= control target key start
LH: loop header
LB: loop body
LE: loop exit
PB: predicated region body
PF: predicated region fallthrough
CT: control target
= control target key end

     0   :  { %8 = vsyncpa [#allocation3], 0  ;;  %s3748_s0 = inlined_call_operand.hbm [shape: f32[512,128], index: 0, kind: input, shape index: {}]   ;;  %s3749_s1 = inlined_call_operand.hbm [shape: f32[128,512], index: 1, kind: input, shape index: {}]   ;;  %s3750_s2 = inlined_call_operand.hbm [shape: f32[512,128], index: 2, kind: input, shape index: {}]   ;;  %s3751_s3 = inlined_call_operand.hbm [shape: f32[512,128], index: 3, kind: output, shape index: {}]  }
   0x1   :  { %10 = vsyncpa [#allocation3 + $0x1], 0 }
   0x2   :  { %11 = vsyncpa [#allocation6], 0 }
   0x3   :  { %12 = vsyncpa [#allocation4], 0 }
   0x4   :  { %14 = vsyncpa [#allocation4 + $0x1], 0  ;;  %s2855_s12 = smov 0   ;;  %s2857_s13 = smov 0  }
   0x5   :  { %s2859_s14 = smov 0   ;;  %s2861_s15 = smov 0  }
   0x6 LB: > { %s2876_s16 = sadd.s32 4294967295, %s2821_s15   ;;  %s2122_s17 = sadd.s32 4294967294, %s2821_s15   ;;  %s2821_s15 = sphi %s2861_s15, %s3771_s15   ;;  %s2817_s14 = sphi %s2859_s14, %s3770_s14   ;;  %s2813_s13 = sphi %s2857_s13, %s3769_s13   ;;  %s2809_s12 = sphi %s2855_s12, %s3768_s12  }
   0x7   : > { %p40_p0 = scmp.ne.s32.totalorder %s2813_s13, %s2809_s12  ;;  %p3752_p1 = scmp.eq.s32.totalorder %s2876_s16, 0 }
   0x8   : > { %p112_p3 = scmp.eq.s32.totalorder %s2122_s17, 1  ;;  %p2123_p5 = scmp.ge.s32.totalorder %s2821_s15, 1 }
   0x9   : > { %p2885_p4 = por %p3752_p1, %p40_p0  ;;  %p119_p7 = scmp.lt.s32.totalorder %s2821_s15, 3 }
   0xa   : > { %p2890_p6 = por %p112_p3, %p40_p0  ;;  %s2823_s21 = smov [#allocation5]  }
   0xb   : > { %s3755_s18 = scalar_select %p2885_p4, 1, 0 }
   0xc   : > { %s3756_s19 = scalar_select %p2890_p6, 1, 0 }
   0xd   : > { %p2895_p8 = pnand %p2123_p5, %p119_p7  ;;  %s131_s22 = sshll.u32 %s2823_s21, 4  ;;  %s2899_s22 = int_to_ptr.vmem [resolvable:$true] %s131_s22 }
   0xe   : > { %s2824_s24 = smov [#allocation7]   ;;  %s2665_s28 = scalar_lea.hbm %s3749_s1, 8192 }
   0xf   : > { %p2346_p9 = pneg %p2895_p8  ;;  %s144_s25 = sshll.u32 %s2824_s24, 4  ;;  %s2910_s25 = int_to_ptr.vmem [resolvable:$true] %s144_s25 }
  0x10   : > { %p2666_p12 = scmp.ne.s32.totalorder %s3749_s1, %s2665_s28  ;;  %p2672_p5 = scmp.lt.u32.totalorder %s2665_s28, %s3749_s1 }
  0x11   : > { %p2906_p11 = pnand %p2346_p9, %p3752_p1 }
  0x13   : > { %p2667_p13 = pneg %p2906_p11 }
  0x15   : > { %p2668_p0 = pnand %p2667_p13, %p2666_p12 }
  0x17   : > { %p2669_p3 = pneg %p2668_p0 }
  0x19   : > { %p2674_p7 = pnand %p2672_p5, %p2669_p3 }
  0x1b   : > { %2677 = shalt.err (!%p2674_p7)
}
  0x1c   : > { %s2678_s6 = scalar_lea.vmem %s2899_s22, 8192  ;;  %p2686_p2 = scmp.lt.s32.totalorder %s2899_s22, %s2899_s22 }
  0x1d   : > { %p2679_p9 = scmp.ne.s32.totalorder %s2899_s22, %s2678_s6  ;;  %p2687_p12 = scmp.lt.s32.totalorder %s2678_s6, %s2678_s6 }
  0x1f   : > { %p2681_p10 = pnand %p2679_p9, %p2667_p13  ;;  %p2688_p0 = por %p2687_p12, %p2686_p2 }
  0x21   : > { %p2682_p1 = pneg %p2681_p10 }
  0x23   : > { %p2689_p6 = pnand %p2688_p0, %p2682_p1 }
  0x25   : > { %2692 = shalt.err (!%p2689_p6)
}
  0x26   : > { %s2825_s7 = smov 512   ;;  %s2826_s8 = smov 32  }
  0x27   : > { %2349 = dma.hbm_to_vmem [thread:$0]  (!%p2906_p11), %s3749_s1, 8192, %s2899_s22, [#allocation6], %s2825_s7, %s2825_s7, %s2826_s8  }
  0x28   : > { %s2693_s21 = scalar_lea.hbm %s3750_s2, 8192 }
  0x29   : > { %p2694_p2 = scmp.ne.s32.totalorder %s3750_s2, %s2693_s21  ;;  %p2700_p10 = scmp.lt.u32.totalorder %s2693_s21, %s3750_s2 }
  0x2b   : > { %p2696_p1 = pnand %p2694_p2, %p2667_p13 }
  0x2d   : > { %p2697_p6 = pneg %p2696_p1 }
  0x2f   : > { %p2702_p3 = pnand %p2700_p10, %p2697_p6 }
  0x31   : > { %2705 = shalt.err (!%p2702_p3)
}
  0x32   : > { %s2706_s22 = scalar_lea.vmem %s2910_s25, 8192  ;;  %p2714_p12 = scmp.lt.s32.totalorder %s2910_s25, %s2910_s25 }
  0x33   : > { %p2707_p5 = scmp.ne.s32.totalorder %s2910_s25, %s2706_s22  ;;  %p2715_p0 = scmp.lt.s32.totalorder %s2706_s22, %s2706_s22 }
  0x35   : > { %p2709_p7 = pnand %p2707_p5, %p2667_p13  ;;  %p2716_p2 = por %p2715_p0, %p2714_p12 }
  0x37   : > { %p2710_p9 = pneg %p2709_p7 }
  0x39   : > { %p2717_p1 = pnand %p2716_p2, %p2710_p9 }
  0x3b   : > { %2720 = shalt.err (!%p2717_p1)
}
  0x3c   : > { %s2827_s29 = smov 128   ;;  %s2828_s30 = smov 8  }
  0x3d   : > { %2352 = dma.hbm_to_vmem [thread:$0]  (!%p2906_p11), %s3750_s2, 8192, %s2910_s25, [#allocation6], %s2827_s29, %s2827_s29, %s2828_s30  }
  0x3e   : > { %s2968_s6 = sadd.s32 1, %s2821_s15   ;;  %s27_s8 = sadd.s32 1, %s2817_s14 }
  0x3f   : > { %s24_s7 = ssub.s32 %s2821_s15, %s2968_s6  ;;  %p34_p6 = scmp.ne.s32.totalorder %s2817_s14, %s2813_s13 }
  0x40   : > { %p25_p13 = scmp.eq.s32.totalorder %s24_s7, 0  ;;  %p35_p10 = scmp.eq.s32.totalorder %s2821_s15, 0 }
  0x41   : > { %p3759_p5 = scmp.eq.s32.totalorder %s2876_s16, 1  ;;  %p2363_p9 = scmp.lt.s32.totalorder %s2821_s15, 2 }
  0x42   : > { %s2977_s9 = scalar_select %p25_p13, %s2817_s14, %s27_s8  }
  0x43   : > { %p36_p3 = por %p35_p10, %p34_p6  ;;  %p2981_p7 = por %p3759_p5, %p34_p6 }
  0x44   : > { %s158_s10 = sand.u32 1, %s2817_s14   ;;  %s2140_s25 = sshll.u32 %s2821_s15, 12 }
  0x45   : > { %s3760_s23 = scalar_select %p2981_p7, 1, 0 }
  0x46   : > { %s2127_s11 = sshll.u32 %s158_s10, 8  ;;  %s2991_s24 = scalar_lea.hbm %s3748_s0, %s2140_s25 }
  0x47   : > { %s162_s26 = scalar_lea.vmem [#allocation2], %s2127_s11  ;;  %p2995_p11 = pnand %p2363_p9, %p36_p3 }
  0x48   : > { %s169_s27 = sshll.u32 %s162_s26, 4  ;;  %s2999_s22 = scalar_lea.sflag [#allocation3], %s158_s10  ;;  %s2993_s27 = int_to_ptr.vmem [resolvable:$true] %s169_s27 }
  0x49   : > { %s2721_s4 = scalar_lea.hbm %s2991_s24, 4096  ;;  %p2723_p0 = pneg %p2995_p11 }
  0x4a   : > { %p2722_p12 = scmp.ne.s32.totalorder %s2991_s24, %s2721_s4  ;;  %s2726_s8 = scalar_lea.hbm %s3748_s0, 8192 }
  0x4b   : > { %p2727_p13 = scmp.lt.u32.totalorder %s2991_s24, %s3748_s0  ;;  %p2728_p6 = scmp.lt.u32.totalorder %s2726_s8, %s2721_s4 }
  0x4c   : > { %p2724_p2 = pnand %p2723_p0, %p2722_p12  ;;  %p2730_p3 = scmp.lt.u32.totalorder %s2721_s4, %s2991_s24 }
  0x4d   : > { %p2729_p10 = por %p2728_p6, %p2727_p13 }
  0x4e   : > { %p2725_p1 = pneg %p2724_p2 }
  0x4f   : > { %p2731_p5 = por %p2730_p3, %p2729_p10 }
  0x51   : > { %p2732_p9 = pnand %p2731_p5, %p2725_p1 }
  0x53   : > { %2735 = shalt.err (!%p2732_p9)
}
  0x54   : > { %s2736_s10 = scalar_lea.vmem %s2993_s27, 4096  ;;  %s2829_s17 = smov [#allocation2]  }
  0x55   : > { %p2737_p12 = scmp.ne.s32.totalorder %s2993_s27, %s2736_s10  ;;  %s2741_s21 = sshll.u32 %s2829_s17, 4  ;;  %s2742_s21 = int_to_ptr.vmem [resolvable:$false] %s2741_s21 }
  0x56   : > { %s2743_s26 = scalar_lea.vmem %s2742_s21, 8192  ;;  %p2744_p4 = scmp.lt.s32.totalorder %s2993_s27, %s2742_s21 }
  0x57   : > { %p2739_p2 = pnand %p2737_p12, %p2723_p0  ;;  %p2745_p13 = scmp.lt.s32.totalorder %s2743_s26, %s2736_s10 }
  0x59   : > { %p2740_p7 = pneg %p2739_p2  ;;  %p2746_p6 = por %p2745_p13, %p2744_p4 }
  0x5b   : > { %p2747_p10 = pnand %p2746_p6, %p2740_p7 }
  0x5d   : > { %2750 = shalt.err (!%p2747_p10)
}
  0x5e   : > { %2356 = dma.hbm_to_vmem [thread:$0]  (!%p2995_p11), %s2991_s24, 4096, %s2993_s27, %s2999_s22, %s2827_s29, %s2827_s29, %s2828_s30  }
  0x5f   : > { %181 = sbr.rel (%p2895_p8) target bundleno = 756 (0x2f4), region = 32  ;;  %s3033_s4 = sand.u32 (!%p2895_p8), 1, %s2813_s13  }
  0x60   : > { %s2131_s5 = sshll.u32 (!%p2895_p8), %s3033_s4, 8  ;;  %s184_s7 = scalar_lea.sflag (!%p2895_p8), [#allocation3], %s3033_s4 }
  0x61   : > { %s3039_s28 = scalar_lea.vmem (!%p2895_p8), [#allocation2], %s2131_s5  ;;  %p3762_p4 = scmp.ne.s32.totalorder (!%p2895_p8), %s3755_s18, 0 }
  0x66   : > { %2796 = dma.done.wait (%p3762_p4), %s184_s7, 4096  }
  0x67   : > { %2798 = vsyncadd (%p3762_p4), %s184_s7, 4294963200  ;;  %p3763_p7 = scmp.eq.s32.totalorder %s2876_s16, 0 }
  0x69   : > { %2800 = dma.done.wait (%p3763_p7), [#allocation6], 16384   ;;  %p3764_p8 = pmov %p3763_p7 }
  0x6a   : > { %v2830_v0 = vmov 0.0   ;;  %v253_v1 = vld [vmem:[#allocation5 + $0x8] sm:$0xff]  ;;  %v255_v3 = vld [vmem:[#allocation5 + $0x18] sm:$0xff]  ;;  %v252_v6 = vld [vmem:[#allocation5] sm:$0xff]  ;;  %s3663_s18 = scalar_lea.vmem [#allocation8], %s2131_s5  ;;  %s2141_s20 = sshll.u32 %s2876_s16, 12 }
  0x6b   : > { %2802 = vsyncadd (%p3764_p8), [#allocation6], 4294950912  ;;  %380 = vmatprep.mubr.f32.mxu0 %v2830_v0  ;;  %637 = vmatprep.mubr.f32.mxu1 %v2830_v0  ;;  %v257_v2 = vld [vmem:[#allocation5 + $0x28] sm:$0xff]  ;;  %v259_v5 = vld [vmem:[#allocation5 + $0x38] sm:$0xff]  ;;  %s2030_s29 = sshll.u32 %s3663_s18, 4  ;;  %s3701_s27 = scalar_lea.hbm %s3751_s3, %s2141_s20  ;;  %s3703_s29 = int_to_ptr.vmem [resolvable:$true] %s2030_s29 }
  0x6c   : > { %v2142_v4 = vpack.c.bf16 %v257_v2, %v253_v1  ;;  %v256_v7 = vld [vmem:[#allocation5 + $0x20] sm:$0xff]  ;;  %v2174_v8 = vpack.c.bf16 %v259_v5, %v255_v3  ;;  %v254_v10 = vld [vmem:[#allocation5 + $0x10] sm:$0xff]  ;;  %v261_v12 = vld [vmem:[#allocation5 + $0x48] sm:$0xff]  ;;  %s2017_s22 = scalar_lea.sflag [#allocation4], %s3033_s4  ;;  %s2751_s16 = scalar_lea.vmem %s3703_s29, 4096 }
  0x6d   : > { %v2144_v9 = vpack.c.bf16 %v256_v7, %v252_v6  ;;  %v258_v11 = vld [vmem:[#allocation5 + $0x30] sm:$0xff]  ;;  %v265_v14 = vld [vmem:[#allocation5 + $0x68] sm:$0xff]  ;;  %v263_v15 = vld [vmem:[#allocation5 + $0x58] sm:$0xff]  ;;  %p2752_p11 = scmp.ne.s32.totalorder %s3703_s29, %s2751_s16  ;;  %p3765_p0 = scmp.ne.s32.totalorder %s3760_s23, 0 }
  0x6e   : > { %2143 = vmatprep.subr.bf16.mxu0 %v2142_v4  ;;  %v2176_v13 = vpack.c.bf16 %v258_v11, %v254_v10  ;;  %v267_v16 = vld [vmem:[#allocation5 + $0x78] sm:$0xff]  ;;  %2175 = vmatprep.subr.bf16.mxu1 %v2174_v8  ;;  %v2146_v17 = vpack.c.bf16 %v265_v14, %v261_v12  ;;  %v260_v19 = vld [vmem:[#allocation5 + $0x40] sm:$0xff]  ;;  %v262_v21 = vld [vmem:[#allocation5 + $0x50] sm:$0xff]  ;;  %s2832_s8 = smov [#allocation8]  }
  0x6f   : > { %2145 = vmatpush1.bf16.msra.mxu0 %v2144_v9  ;;  %v2178_v18 = vpack.c.bf16 %v267_v16, %v263_v15  ;;  %v264_v20 = vld [vmem:[#allocation5 + $0x60] sm:$0xff]  ;;  %v266_v23 = vld [vmem:[#allocation5 + $0x70] sm:$0xff]  ;;  %v269_v24 = vld [vmem:[#allocation5 + $0x88] sm:$0xff]  ;;  %p2753_p1 = pnand %p2752_p11, %p3765_p0  ;;  %s2755_s11 = sshll.u32 %s2832_s8, 4  ;;  %s2756_s11 = int_to_ptr.vmem [resolvable:$false] %s2755_s11 }
  0x70   : > { %2177 = vmatpush1.bf16.msra.mxu1 %v2176_v13  ;;  %v2148_v22 = vpack.c.bf16 %v264_v20, %v260_v19  ;;  %v273_v25 = vld [vmem:[#allocation5 + $0xa8] sm:$0xff]  ;;  %2147 = vmatprep.subr.bf16.mxu0 %v2146_v17  ;;  %v2180_v26 = vpack.c.bf16 %v266_v23, %v262_v21  ;;  %v271_v28 = vld [vmem:[#allocation5 + $0x98] sm:$0xff]  ;;  %v268_v30 = vld [vmem:[#allocation5 + $0x80] sm:$0xff]  ;;  %s2757_s25 = scalar_lea.vmem %s2756_s11, 8192  ;;  %p2758_p5 = scmp.lt.s32.totalorder %s3703_s29, %s2756_s11 }
  0x71   : > { %2179 = vmatprep.subr.bf16.mxu1 %v2178_v18  ;;  %v2150_v27 = vpack.c.bf16 %v273_v25, %v269_v24  ;;  %v275_v29 = vld [vmem:[#allocation5 + $0xb8] sm:$0xff]  ;;  %v272_v32 = vld [vmem:[#allocation5 + $0xa0] sm:$0xff]  ;;  %v270_v33 = vld [vmem:[#allocation5 + $0x90] sm:$0xff]  ;;  %p2754_p3 = pneg %p2753_p1  ;;  %p2759_p9 = scmp.lt.s32.totalorder %s2757_s25, %s2751_s16 }
  0x72   : > { %v2182_v31 = vpack.c.bf16 %v275_v29, %v271_v28  ;;  %v274_v34 = vld [vmem:[#allocation5 + $0xb0] sm:$0xff]  ;;  %v2152_v35 = vpack.c.bf16 %v272_v32, %v268_v30  ;;  %v277_v36 = vld [vmem:[#allocation5 + $0xc8] sm:$0xff]  ;;  %v279_v38 = vld [vmem:[#allocation5 + $0xd8] sm:$0xff] }
  0x73   : > { %2149 = vmatpush1.bf16.msra.mxu0 %v2148_v22  ;;  %v281_v37 = vld [vmem:[#allocation5 + $0xe8] sm:$0xff]  ;;  %v2184_v39 = vpack.c.bf16 %v274_v34, %v270_v33  ;;  %v283_v41 = vld [vmem:[#allocation5 + $0xf8] sm:$0xff]  ;;  %v276_v42 = vld [vmem:[#allocation5 + $0xc0] sm:$0xff]  ;;  %p2760_p12 = por %p2759_p9, %p2758_p5 }
  0x74   : > { %2181 = vmatpush1.bf16.msra.mxu1 %v2180_v26  ;;  %2151 = vmatprep.subr.bf16.mxu0 %v2150_v27  ;;  %v2154_v40 = vpack.c.bf16 %v281_v37, %v277_v36  ;;  %v280_v43 = vld [vmem:[#allocation5 + $0xe0] sm:$0xff]  ;;  %v2186_v44 = vpack.c.bf16 %v283_v41, %v279_v38  ;;  %v278_v45 = vld [vmem:[#allocation5 + $0xd0] sm:$0xff]  ;;  %v285_v47 = vld [vmem:[#allocation5 + $0x108] sm:$0xff] }
  0x75   : > { %2183 = vmatprep.subr.bf16.mxu1 %v2182_v31  ;;  %v282_v46 = vld [vmem:[#allocation5 + $0xf0] sm:$0xff]  ;;  %v289_v48 = vld [vmem:[#allocation5 + $0x128] sm:$0xff]  ;;  %v287_v49 = vld [vmem:[#allocation5 + $0x118] sm:$0xff]  ;;  %v2156_v51 = vpack.c.bf16 %v280_v43, %v276_v42  ;;  %p2761_p2 = pnand %p2760_p12, %p2754_p3 }
  0x76   : > { %v291_v50 = vld [vmem:[#allocation5 + $0x138] sm:$0xff]  ;;  %v2188_v52 = vpack.c.bf16 %v282_v46, %v278_v45  ;;  %v2158_v53 = vpack.c.bf16 %v289_v48, %v285_v47  ;;  %v284_v54 = vld [vmem:[#allocation5 + $0x100] sm:$0xff]  ;;  %v286_v56 = vld [vmem:[#allocation5 + $0x110] sm:$0xff] }
  0x77   : > { %2153 = vmatpush1.bf16.msra.mxu0 %v2152_v35  ;;  %v288_v55 = vld [vmem:[#allocation5 + $0x120] sm:$0xff]  ;;  %v2190_v57 = vpack.c.bf16 %v291_v50, %v287_v49  ;;  %v290_v58 = vld [vmem:[#allocation5 + $0x130] sm:$0xff]  ;;  %v293_v59 = vld [vmem:[#allocation5 + $0x148] sm:$0xff] }
  0x78   : > { %2185 = vmatpush1.bf16.msra.mxu1 %v2184_v39  ;;  %2155 = vmatprep.subr.bf16.mxu0 %v2154_v40  ;;  %v297_v60 = vld [vmem:[#allocation5 + $0x168] sm:$0xff]  ;;  %v295_v61 = vld [vmem:[#allocation5 + $0x158] sm:$0xff]  ;;  %v2160_v63 = vpack.c.bf16 %v288_v55, %v284_v54  ;;  %v2192_v1 = vpack.c.bf16 %v290_v58, %v286_v56  ;;  %v292_v3 = vld [vmem:[#allocation5 + $0x140] sm:$0xff]  ;;  %v2831_v39 = vmov 0.0|0.0  }
  0x79   : > { %2187 = vmatprep.subr.bf16.mxu1 %v2186_v44  ;;  %v299_v62 = vld [vmem:[#allocation5 + $0x178] sm:$0xff]  ;;  %v2162_v2 = vpack.c.bf16 %v297_v60, %v293_v59  ;;  %v296_v4 = vld [vmem:[#allocation5 + $0x160] sm:$0xff]  ;;  %v294_v5 = vld [vmem:[#allocation5 + $0x150] sm:$0xff] }
  0x7a   : > { %v2194_v6 = vpack.c.bf16 %v299_v62, %v295_v61  ;;  %v298_v7 = vld [vmem:[#allocation5 + $0x170] sm:$0xff]  ;;  %v301_v8 = vld [vmem:[#allocation5 + $0x188] sm:$0xff]  ;;  %v303_v10 = vld [vmem:[#allocation5 + $0x198] sm:$0xff]  ;;  %v2164_v12 = vpack.c.bf16 %v296_v4, %v292_v3 }
  0x7b   : > { %2157 = vmatpush1.bf16.msra.mxu0 %v2156_v51  ;;  %v305_v9 = vld [vmem:[#allocation5 + $0x1a8] sm:$0xff]  ;;  %v307_v11 = vld [vmem:[#allocation5 + $0x1b8] sm:$0xff]  ;;  %v2196_v13 = vpack.c.bf16 %v298_v7, %v294_v5  ;;  %v300_v15 = vld [vmem:[#allocation5 + $0x180] sm:$0xff] }
  0x7c   : > { %2189 = vmatpush1.bf16.msra.mxu1 %v2188_v52  ;;  %2159 = vmatprep.subr.bf16.mxu0 %v2158_v53  ;;  %v2166_v14 = vpack.c.bf16 %v305_v9, %v301_v8  ;;  %v304_v16 = vld [vmem:[#allocation5 + $0x1a0] sm:$0xff]  ;;  %v302_v17 = vld [vmem:[#allocation5 + $0x190] sm:$0xff]  ;;  %v2198_v18 = vpack.c.bf16 %v307_v11, %v303_v10  ;;  %v309_v20 = vld [vmem:[#allocation5 + $0x1c8] sm:$0xff] }
  0x7d   : > { %2191 = vmatprep.subr.bf16.mxu1 %v2190_v57  ;;  %v306_v19 = vld [vmem:[#allocation5 + $0x1b0] sm:$0xff]  ;;  %v313_v21 = vld [vmem:[#allocation5 + $0x1e8] sm:$0xff]  ;;  %v311_v22 = vld [vmem:[#allocation5 + $0x1d8] sm:$0xff]  ;;  %v2168_v24 = vpack.c.bf16 %v304_v16, %v300_v15 }
  0x7e   : > { %v315_v23 = vld [vmem:[#allocation5 + $0x1f8] sm:$0xff]  ;;  %v2200_v25 = vpack.c.bf16 %v306_v19, %v302_v17  ;;  %v2170_v26 = vpack.c.bf16 %v313_v21, %v309_v20  ;;  %v308_v27 = vld [vmem:[#allocation5 + $0x1c0] sm:$0xff]  ;;  %v310_v30 = vld [vmem:[#allocation5 + $0x1d0] sm:$0xff] }
  0x7f   : > { %2161 = vmatpush1.bf16.msra.mxu0 %v2160_v63  ;;  %v312_v28 = vld [vmem:[#allocation5 + $0x1e0] sm:$0xff]  ;;  %v2202_v29 = vpack.c.bf16 %v315_v23, %v311_v22  ;;  %v314_v31 = vld [vmem:[#allocation5 + $0x1f0] sm:$0xff]  ;;  %v1471_v35 = vld [vmem:[#allocation7 + $0x8] sm:$0xff] }
  0x80   : > { %2193 = vmatpush1.bf16.msra.mxu1 %v2192_v1  ;;  %2163 = vmatprep.subr.bf16.mxu0 %v2162_v2  ;;  %v2172_v32 = vpack.c.bf16 %v312_v28, %v308_v27  ;;  %v2204_v33 = vpack.c.bf16 %v314_v31, %v310_v30  ;;  %v1470_v34 = vld [vmem:[#allocation7] sm:$0xff]  ;;  %v1503_v37 = vld [vmem:[#allocation7 + $0x108] sm:$0xff]  ;;  %v1472_v42 = vld [vmem:[#allocation7 + $0x10] sm:$0xff] }
  0x81   : > { %2195 = vmatprep.subr.bf16.mxu1 %v2194_v6  ;;  %v1502_v36 = vld [vmem:[#allocation7 + $0x100] sm:$0xff]  ;;  %v2207_v40 = vpack.c.bf16 %v1471_v35, %v1470_v34  ;;  %v1473_v43 = vld [vmem:[#allocation7 + $0x18] sm:$0xff]  ;;  %v1504_v44 = vld [vmem:[#allocation7 + $0x110] sm:$0xff] }
  0x82   : > { %v220_v38 = vld [vmem:[%s3039_s28] sm:$0xff]  ;;  %v2255_v41 = vpack.c.bf16 %v1503_v37, %v1502_v36  ;;  %v1505_v45 = vld [vmem:[#allocation7 + $0x118] sm:$0xff]  ;;  %v221_v46 = vld [vmem:[%s3039_s28 + $0x8] sm:$0xff]  ;;  %v2210_v47 = vpack.c.bf16 %v1473_v43, %v1472_v42 }
  0x83   : > { %2165 = vmatpush1.bf16.msra.mxu0 %v2164_v12  ;;  %v2258_v48 = vpack.c.bf16 %v1505_v45, %v1504_v44  ;;  %v1474_v49 = vld [vmem:[#allocation7 + $0x20] sm:$0xff]  ;;  %v1475_v50 = vld [vmem:[#allocation7 + $0x28] sm:$0xff]  ;;  %v222_v53 = vld [vmem:[%s3039_s28 + $0x10] sm:$0xff] }
  0x84   : > { %2197 = vmatpush1.bf16.msra.mxu1 %v2196_v13  ;;  %2167 = vmatprep.subr.bf16.mxu0 %v2166_v14  ;;  %v1506_v51 = vld [vmem:[#allocation7 + $0x120] sm:$0xff]  ;;  %v1507_v52 = vld [vmem:[#allocation7 + $0x128] sm:$0xff]  ;;  %v2213_v54 = vpack.c.bf16 %v1475_v50, %v1474_v49  ;;  %v1476_v56 = vld [vmem:[#allocation7 + $0x30] sm:$0xff] }
  0x85   : > { %2199 = vmatprep.subr.bf16.mxu1 %v2198_v18  ;;  %v2261_v55 = vpack.c.bf16 %v1507_v52, %v1506_v51  ;;  %v1477_v57 = vld [vmem:[#allocation7 + $0x38] sm:$0xff]  ;;  %v1508_v58 = vld [vmem:[#allocation7 + $0x130] sm:$0xff]  ;;  %v1478_v63 = vld [vmem:[#allocation7 + $0x40] sm:$0xff] }
  0x86   : > { %v1509_v59 = vld [vmem:[#allocation7 + $0x138] sm:$0xff]  ;;  %v2216_v61 = vpack.c.bf16 %v1477_v57, %v1476_v56  ;;  %v1479_v1 = vld [vmem:[#allocation7 + $0x48] sm:$0xff]  ;;  %v1510_v2 = vld [vmem:[#allocation7 + $0x140] sm:$0xff] }
  0x87   : > { %2169 = vmatpush1.bf16.msra.mxu0 %v2168_v24  ;;  %v223_v60 = vld [vmem:[%s3039_s28 + $0x18] sm:$0xff]  ;;  %v2264_v62 = vpack.c.bf16 %v1509_v59, %v1508_v58  ;;  %v1511_v3 = vld [vmem:[#allocation7 + $0x148] sm:$0xff]  ;;  %v224_v4 = vld [vmem:[%s3039_s28 + $0x20] sm:$0xff]  ;;  %v2219_v5 = vpack.c.bf16 %v1479_v1, %v1478_v63 }
  0x88   : > { %2201 = vmatpush1.bf16.msra.mxu1 %v2200_v25  ;;  %2171 = vmatprep.subr.bf16.mxu0 %v2170_v26  ;;  %v2267_v6 = vpack.c.bf16 %v1511_v3, %v1510_v2  ;;  %v1480_v7 = vld [vmem:[#allocation7 + $0x50] sm:$0xff]  ;;  %v1481_v8 = vld [vmem:[#allocation7 + $0x58] sm:$0xff]  ;;  %v225_v11 = vld [vmem:[%s3039_s28 + $0x28] sm:$0xff] }
  0x89   : > { %2203 = vmatprep.subr.bf16.mxu1 %v2202_v29  ;;  %v1512_v9 = vld [vmem:[#allocation7 + $0x150] sm:$0xff]  ;;  %v1513_v10 = vld [vmem:[#allocation7 + $0x158] sm:$0xff]  ;;  %v2222_v12 = vpack.c.bf16 %v1481_v8, %v1480_v7  ;;  %v1482_v14 = vld [vmem:[#allocation7 + $0x60] sm:$0xff] }
  0x8a   : > { %v2270_v13 = vpack.c.bf16 %v1513_v10, %v1512_v9  ;;  %v1483_v15 = vld [vmem:[#allocation7 + $0x68] sm:$0xff]  ;;  %v1514_v16 = vld [vmem:[#allocation7 + $0x160] sm:$0xff]  ;;  %v226_v18 = vld [vmem:[%s3039_s28 + $0x30] sm:$0xff] }
  0x8b   : > { %2173 = vmatpush1.bf16.msra.mxu0 %v2172_v32  ;;  %v1515_v17 = vld [vmem:[#allocation7 + $0x168] sm:$0xff]  ;;  %v2225_v19 = vpack.c.bf16 %v1483_v15, %v1482_v14  ;;  %v1484_v21 = vld [vmem:[#allocation7 + $0x70] sm:$0xff]  ;;  %v1485_v22 = vld [vmem:[#allocation7 + $0x78] sm:$0xff] }
  0x8c   : > { %2205 = vmatpush1.bf16.msra.mxu1 %v2204_v33  ;;  %2254 = vmatprep.subr.bf16.mxu0 %v2831_v39  ;;  %v2273_v20 = vpack.c.bf16 %v1515_v17, %v1514_v16  ;;  %v1516_v23 = vld [vmem:[#allocation7 + $0x170] sm:$0xff]  ;;  %v1517_v24 = vld [vmem:[#allocation7 + $0x178] sm:$0xff]  ;;  %v2228_v26 = vpack.c.bf16 %v1485_v22, %v1484_v21  ;;  %v1486_v28 = vld [vmem:[#allocation7 + $0x80] sm:$0xff] }
  0x8d   : > { %2206 = vmatprep.subr.bf16.mxu1 %v2831_v39  ;;  %v227_v25 = vld [vmem:[%s3039_s28 + $0x38] sm:$0xff]  ;;  %v2276_v27 = vpack.c.bf16 %v1517_v24, %v1516_v23  ;;  %v1487_v29 = vld [vmem:[#allocation7 + $0x88] sm:$0xff]  ;;  %v1518_v30 = vld [vmem:[#allocation7 + $0x180] sm:$0xff] }
  0x8e   : > { %381 = vmatmul.mubr.f32.vlgmr.msra.gmra.mrb[0].mxu0 %v220_v38  ;;  %v1519_v31 = vld [vmem:[#allocation7 + $0x188] sm:$0xff]  ;;  %v228_v32 = vld [vmem:[%s3039_s28 + $0x40] sm:$0xff]  ;;  %v2231_v33 = vpack.c.bf16 %v1487_v29, %v1486_v28  ;;  %v1488_v35 = vld [vmem:[#allocation7 + $0x90] sm:$0xff] }
  0x8f   : > { %638 = vmatmul.mubr.f32.vlgmr.msra.gmra.mrb[0].mxu1 %v220_v38  ;;  %386 = vmatprep.mubr.f32.mxu0 %v2830_v0  ;;  %v2279_v34 = vpack.c.bf16 %v1519_v31, %v1518_v30  ;;  %v1489_v36 = vld [vmem:[#allocation7 + $0x98] sm:$0xff]  ;;  %v1520_v37 = vld [vmem:[#allocation7 + $0x190] sm:$0xff]  ;;  %v1490_v43 = vld [vmem:[#allocation7 + $0xa0] sm:$0xff] }
  0x90   : > { %643 = vmatprep.mubr.f32.mxu1 %v2830_v0  ;;  %2208 = vmatpush1.bf16.msra.mxu1 %v2207_v40  ;;  %v1521_v38 = vld [vmem:[#allocation7 + $0x198] sm:$0xff]  ;;  %v229_v40 = vld [vmem:[%s3039_s28 + $0x48] sm:$0xff]  ;;  %v1522_v45 = vld [vmem:[#allocation7 + $0x1a0] sm:$0xff] }
  0x91   : > { %2256 = vmatpush1.bf16.msra.mxu0 %v2255_v41  ;;  %2209 = vmatprep.subr.bf16.mxu1 %v2831_v39  ;;  %v2234_v41 = vpack.c.bf16 %v1489_v36, %v1488_v35  ;;  %v2282_v42 = vpack.c.bf16 %v1521_v38, %v1520_v37  ;;  %v1491_v44 = vld [vmem:[#allocation7 + $0xa8] sm:$0xff]  ;;  %v1492_v50 = vld [vmem:[#allocation7 + $0xb0] sm:$0xff]  ;;  %v1493_v51 = vld [vmem:[#allocation7 + $0xb8] sm:$0xff] }
  0x92   : > { %387 = vmatmul.mubr.f32.gmra.mrb[2].mxu0 %v221_v46  ;;  %2257 = vmatprep.subr.bf16.mxu0 %v2831_v39  ;;  %v1524_v52 = vld [vmem:[#allocation7 + $0x1b0] sm:$0xff]  ;;  %v1494_v57 = vld [vmem:[#allocation7 + $0xc0] sm:$0xff]  ;;  %v1495_v58 = vld [vmem:[#allocation7 + $0xc8] sm:$0xff] }
  0x93   : > { %644 = vmatmul.mubr.f32.gmra.mrb[2].mxu1 %v221_v46  ;;  %392 = vmatprep.mubr.f32.mxu0 %v2830_v0  ;;  %v1523_v46 = vld [vmem:[#allocation7 + $0x1a8] sm:$0xff]  ;;  %v1526_v59 = vld [vmem:[#allocation7 + $0x1c0] sm:$0xff]  ;;  %v1496_v1 = vld [vmem:[#allocation7 + $0xd0] sm:$0xff] }
  0x94   : > { %649 = vmatprep.mubr.f32.mxu1 %v2830_v0  ;;  %2211 = vmatpush1.bf16.msra.mxu1 %v2210_v47  ;;  %v230_v47 = vld [vmem:[%s3039_s28 + $0x50] sm:$0xff]  ;;  %v2285_v49 = vpack.c.bf16 %v1523_v46, %v1522_v45  ;;  %v1497_v2 = vld [vmem:[#allocation7 + $0xd8] sm:$0xff]  ;;  %v236_v10 = vld [vmem:[%s3039_s28 + $0x80] sm:$0xff] }
  0x95   : > { %2259 = vmatpush1.bf16.msra.mxu0 %v2258_v48  ;;  %2212 = vmatprep.subr.bf16.mxu1 %v2831_v39  ;;  %v2237_v48 = vpack.c.bf16 %v1491_v44, %v1490_v43  ;;  %v1528_v3 = vld [vmem:[#allocation7 + $0x1d0] sm:$0xff]  ;;  %v235_v9 = vld [vmem:[%s3039_s28 + $0x78] sm:$0xff]  ;;  %v240_v14 = vld [vmem:[%s3039_s28 + $0xa0] sm:$0xff] }
  0x96   : > { %393 = vmatmul.mubr.f32.gmra.mrb[4].mxu0 %v222_v53  ;;  %2260 = vmatprep.subr.bf16.mxu0 %v2831_v39  ;;  %v234_v8 = vld [vmem:[%s3039_s28 + $0x70] sm:$0xff]  ;;  %v241_v15 = vld [vmem:[%s3039_s28 + $0xa8] sm:$0xff]  ;;  %v243_v17 = vld [vmem:[%s3039_s28 + $0xb8] sm:$0xff] }
  0x97   : > { %650 = vmatmul.mubr.f32.gmra.mrb[4].mxu1 %v222_v53  ;;  %398 = vmatprep.mubr.f32.mxu0 %v2830_v0  ;;  %v1525_v53 = vld [vmem:[#allocation7 + $0x1b8] sm:$0xff]  ;;  %v242_v16 = vld [vmem:[%s3039_s28 + $0xb0] sm:$0xff]  ;;  %v1530_v21 = vld [vmem:[#allocation7 + $0x1e0] sm:$0xff] }
  0x98   : > { %655 = vmatprep.mubr.f32.mxu1 %v2830_v0  ;;  %2214 = vmatpush1.bf16.msra.mxu1 %v2213_v54  ;;  %v231_v54 = vld [vmem:[%s3039_s28 + $0x58] sm:$0xff]  ;;  %v2288_v56 = vpack.c.bf16 %v1525_v53, %v1524_v52  ;;  %v1531_v23 = vld [vmem:[#allocation7 + $0x1e8] sm:$0xff]  ;;  %v1532_v28 = vld [vmem:[#allocation7 + $0x1f0] sm:$0xff] }
  0x99   : > { %2262 = vmatpush1.bf16.msra.mxu0 %v2261_v55  ;;  %2215 = vmatprep.subr.bf16.mxu1 %v2831_v39  ;;  %v2240_v55 = vpack.c.bf16 %v1493_v51, %v1492_v50  ;;  %v245_v24 = vld [vmem:[%s3039_s28 + $0xc8] sm:$0xff]  ;;  %v1533_v30 = vld [vmem:[#allocation7 + $0x1f8] sm:$0xff]  ;;  %v246_v31 = vld [vmem:[%s3039_s28 + $0xd0] sm:$0xff] }
  0x9a   : > { %399 = vmatmul.mubr.f32.gmra.mrb[6].mxu0 %v223_v60  ;;  %2263 = vmatprep.subr.bf16.mxu0 %v2831_v39  ;;  %v250_v35 = vld [vmem:[%s3039_s28 + $0xf0] sm:$0xff]  ;;  %v251_v36 = vld [vmem:[%s3039_s28 + $0xf8] sm:$0xff] }
  0x9b   : > { %656 = vmatmul.mubr.f32.gmra.mrb[6].mxu1 %v223_v60  ;;  %404 = vmatprep.mubr.f32.mxu0 %v2830_v0  ;;  %v1527_v60 = vld [vmem:[#allocation7 + $0x1c8] sm:$0xff] }
  0x9c   : > { %661 = vmatprep.mubr.f32.mxu1 %v2830_v0  ;;  %2217 = vmatpush1.bf16.msra.mxu1 %v2216_v61  ;;  %v232_v61 = vld [vmem:[%s3039_s28 + $0x60] sm:$0xff]  ;;  %v2291_v63 = vpack.c.bf16 %v1527_v60, %v1526_v59 }
  0x9d   : > { %2265 = vmatpush1.bf16.msra.mxu0 %v2264_v62  ;;  %2218 = vmatprep.subr.bf16.mxu1 %v2831_v39  ;;  %v2243_v62 = vpack.c.bf16 %v1495_v58, %v1494_v57 }
  0x9e   : > { %405 = vmatmul.mubr.f32.gmra.mrb[8].mxu0 %v224_v4  ;;  %2266 = vmatprep.subr.bf16.mxu0 %v2831_v39 }
  0x9f   : > { %662 = vmatmul.mubr.f32.gmra.mrb[8].mxu1 %v224_v4  ;;  %410 = vmatprep.mubr.f32.mxu0 %v2830_v0  ;;  %v1529_v4 = vld [vmem:[#allocation7 + $0x1d8] sm:$0xff] }
  0xa0   : > { %667 = vmatprep.mubr.f32.mxu1 %v2830_v0  ;;  %2220 = vmatpush1.bf16.msra.mxu1 %v2219_v5  ;;  %v233_v5 = vld [vmem:[%s3039_s28 + $0x68] sm:$0xff]  ;;  %v2294_v7 = vpack.c.bf16 %v1529_v4, %v1528_v3 }
  0xa1   : > { %2268 = vmatpush1.bf16.msra.mxu0 %v2267_v6  ;;  %2221 = vmatprep.subr.bf16.mxu1 %v2831_v39  ;;  %v2246_v6 = vpack.c.bf16 %v1497_v2, %v1496_v1 }
  0xa2   : > { %411 = vmatmul.mubr.f32.gmra.mrb[10].mxu0 %v225_v11  ;;  %2269 = vmatprep.subr.bf16.mxu0 %v2831_v39 }
  0xa3   : > { %668 = vmatmul.mubr.f32.gmra.mrb[10].mxu1 %v225_v11  ;;  %416 = vmatprep.mubr.f32.mxu0 %v2830_v0  ;;  %v237_v11 = vld [vmem:[%s3039_s28 + $0x88] sm:$0xff] }
  0xa4   : > { %673 = vmatprep.mubr.f32.mxu1 %v2830_v0  ;;  %2223 = vmatpush1.bf16.msra.mxu1 %v2222_v12  ;;  %v238_v12 = vld [vmem:[%s3039_s28 + $0x90] sm:$0xff] }
  0xa5   : > { %2271 = vmatpush1.bf16.msra.mxu0 %v2270_v13  ;;  %2224 = vmatprep.subr.bf16.mxu1 %v2831_v39  ;;  %v239_v13 = vld [vmem:[%s3039_s28 + $0x98] sm:$0xff] }
  0xa6   : > { %417 = vmatmul.mubr.f32.gmra.mrb[12].mxu0 %v226_v18  ;;  %2272 = vmatprep.subr.bf16.mxu0 %v2831_v39 }
  0xa7   : > { %674 = vmatmul.mubr.f32.gmra.mrb[12].mxu1 %v226_v18  ;;  %422 = vmatprep.mubr.f32.mxu0 %v2830_v0  ;;  %v244_v18 = vld [vmem:[%s3039_s28 + $0xc0] sm:$0xff] }
  0xa8   : > { %679 = vmatprep.mubr.f32.mxu1 %v2830_v0  ;;  %2226 = vmatpush1.bf16.msra.mxu1 %v2225_v19  ;;  %v1498_v19 = vld [vmem:[#allocation7 + $0xe0] sm:$0xff] }
  0xa9   : > { %2274 = vmatpush1.bf16.msra.mxu0 %v2273_v20  ;;  %2227 = vmatprep.subr.bf16.mxu1 %v2831_v39  ;;  %v1499_v20 = vld [vmem:[#allocation7 + $0xe8] sm:$0xff] }
  0xaa   : > { %423 = vmatmul.mubr.f32.gmra.mrb[14].mxu0 %v227_v25  ;;  %2275 = vmatprep.subr.bf16.mxu0 %v2831_v39  ;;  %v2249_v22 = vpack.c.bf16 %v1499_v20, %v1498_v19 }
  0xab   : > { %680 = vmatmul.mubr.f32.gmra.mrb[14].mxu1 %v227_v25  ;;  %428 = vmatprep.mubr.f32.mxu0 %v2830_v0  ;;  %v2297_v25 = vpack.c.bf16 %v1531_v23, %v1530_v21 }
  0xac   : > { %685 = vmatprep.mubr.f32.mxu1 %v2830_v0  ;;  %2229 = vmatpush1.bf16.msra.mxu1 %v2228_v26  ;;  %v1500_v26 = vld [vmem:[#allocation7 + $0xf0] sm:$0xff] }
  0xad   : > { %2277 = vmatpush1.bf16.msra.mxu0 %v2276_v27  ;;  %2230 = vmatprep.subr.bf16.mxu1 %v2831_v39  ;;  %v1501_v27 = vld [vmem:[#allocation7 + $0xf8] sm:$0xff] }
  0xae   : > { %429 = vmatmul.mubr.f32.gmra.mrb[16].mxu0 %v228_v32  ;;  %2278 = vmatprep.subr.bf16.mxu0 %v2831_v39  ;;  %v2252_v29 = vpack.c.bf16 %v1501_v27, %v1500_v26 }
  0xaf   : > { %686 = vmatmul.mubr.f32.gmra.mrb[16].mxu1 %v228_v32  ;;  %434 = vmatprep.mubr.f32.mxu0 %v2830_v0  ;;  %v2300_v32 = vpack.c.bf16 %v1533_v30, %v1532_v28 }
  0xb0   : > { %691 = vmatprep.mubr.f32.mxu1 %v2830_v0  ;;  %2232 = vmatpush1.bf16.msra.mxu1 %v2231_v33  ;;  %v247_v33 = vld [vmem:[%s3039_s28 + $0xd8] sm:$0xff] }
  0xb1   : > { %2280 = vmatpush1.bf16.msra.mxu0 %v2279_v34  ;;  %2233 = vmatprep.subr.bf16.mxu1 %v2831_v39  ;;  %v249_v34 = vld [vmem:[%s3039_s28 + $0xe8] sm:$0xff] }
  0xb2   : > { %435 = vmatmul.mubr.f32.gmra.mrb[18].mxu0 %v229_v40  ;;  %2281 = vmatprep.subr.bf16.mxu0 %v2831_v39 }
  0xb3   : > { %692 = vmatmul.mubr.f32.gmra.mrb[18].mxu1 %v229_v40  ;;  %440 = vmatprep.mubr.f32.mxu0 %v2830_v0 }
  0xb4   : > { %697 = vmatprep.mubr.f32.mxu1 %v2830_v0  ;;  %2235 = vmatpush1.bf16.msra.mxu1 %v2234_v41 }
  0xb5   : > { %2283 = vmatpush1.bf16.msra.mxu0 %v2282_v42  ;;  %2236 = vmatprep.subr.bf16.mxu1 %v2831_v39 }
  0xb6   : > { %441 = vmatmul.mubr.f32.gmra.mrb[20].mxu0 %v230_v47  ;;  %2284 = vmatprep.subr.bf16.mxu0 %v2831_v39 }
  0xb7   : > { %698 = vmatmul.mubr.f32.gmra.mrb[20].mxu1 %v230_v47  ;;  %446 = vmatprep.mubr.f32.mxu0 %v2830_v0 }
  0xb8   : > { %703 = vmatprep.mubr.f32.mxu1 %v2830_v0  ;;  %2238 = vmatpush1.bf16.msra.mxu1 %v2237_v48 }
  0xb9   : > { %2286 = vmatpush1.bf16.msra.mxu0 %v2285_v49  ;;  %2239 = vmatprep.subr.bf16.mxu1 %v2831_v39 }
  0xba   : > { %447 = vmatmul.mubr.f32.gmra.mrb[22].mxu0 %v231_v54  ;;  %2287 = vmatprep.subr.bf16.mxu0 %v2831_v39 }
  0xbb   : > { %704 = vmatmul.mubr.f32.gmra.mrb[22].mxu1 %v231_v54  ;;  %452 = vmatprep.mubr.f32.mxu0 %v2830_v0 }
  0xbc   : > { %709 = vmatprep.mubr.f32.mxu1 %v2830_v0  ;;  %2241 = vmatpush1.bf16.msra.mxu1 %v2240_v55 }
  0xbd   : > { %2289 = vmatpush1.bf16.msra.mxu0 %v2288_v56  ;;  %2242 = vmatprep.subr.bf16.mxu1 %v2831_v39 }
  0xbe   : > { %453 = vmatmul.mubr.f32.gmra.mrb[24].mxu0 %v232_v61  ;;  %2290 = vmatprep.subr.bf16.mxu0 %v2831_v39 }
  0xbf   : > { %710 = vmatmul.mubr.f32.gmra.mrb[24].mxu1 %v232_v61  ;;  %458 = vmatprep.mubr.f32.mxu0 %v2830_v0 }
  0xc0   : > { %715 = vmatprep.mubr.f32.mxu1 %v2830_v0  ;;  %2244 = vmatpush1.bf16.msra.mxu1 %v2243_v62 }
  0xc1   : > { %2292 = vmatpush1.bf16.msra.mxu0 %v2291_v63  ;;  %2245 = vmatprep.subr.bf16.mxu1 %v2831_v39 }
  0xc2   : > { %459 = vmatmul.mubr.f32.gmra.mrb[26].mxu0 %v233_v5  ;;  %2293 = vmatprep.subr.bf16.mxu0 %v2831_v39 }
  0xc3   : > { %716 = vmatmul.mubr.f32.gmra.mrb[26].mxu1 %v233_v5  ;;  %464 = vmatprep.mubr.f32.mxu0 %v2830_v0 }
  0xc4   : > { %721 = vmatprep.mubr.f32.mxu1 %v2830_v0  ;;  %2247 = vmatpush1.bf16.msra.mxu1 %v2246_v6 }
  0xc5   : > { %2295 = vmatpush1.bf16.msra.mxu0 %v2294_v7  ;;  %2248 = vmatprep.subr.bf16.mxu1 %v2831_v39 }
  0xc6   : > { %465 = vmatmul.mubr.f32.gmra.mrb[28].mxu0 %v234_v8  ;;  %2296 = vmatprep.subr.bf16.mxu0 %v2831_v39 }
  0xc7   : > { %722 = vmatmul.mubr.f32.gmra.mrb[28].mxu1 %v234_v8  ;;  %470 = vmatprep.mubr.f32.mxu0 %v2830_v0 }
  0xc8   : > { %727 = vmatprep.mubr.f32.mxu1 %v2830_v0  ;;  %2250 = vmatpush1.bf16.msra.mxu1 %v2249_v22 }
  0xc9   : > { %2298 = vmatpush1.bf16.msra.mxu0 %v2297_v25  ;;  %2251 = vmatprep.subr.bf16.mxu1 %v2831_v39 }
  0xca   : > { %471 = vmatmul.mubr.f32.gmra.mrb[30].mxu0 %v235_v9  ;;  %2299 = vmatprep.subr.bf16.mxu0 %v2831_v39  ;;  %v248_v39 = vld [vmem:[%s3039_s28 + $0xe0] sm:$0xff] }
  0xcb   : > { %728 = vmatmul.mubr.f32.gmra.mrb[30].mxu1 %v235_v9  ;;  %476 = vmatprep.mubr.f32.mxu0 %v2830_v0 }
  0xcc   : > { %733 = vmatprep.mubr.f32.mxu1 %v2830_v0  ;;  %2253 = vmatpush1.bf16.msra.mxu1 %v2252_v29 }
  0xcd   : > { %2301 = vmatpush1.bf16.msra.mxu0 %v2300_v32 }
  0xce   : > { %477 = vmatmul.mubr.f32.gmra.mrb[32].mxu0 %v236_v10 }
  0xcf   : > { %734 = vmatmul.mubr.f32.gmra.mrb[32].mxu1 %v236_v10  ;;  %482 = vmatprep.mubr.f32.mxu0 %v2830_v0 }
  0xd0   : > { %739 = vmatprep.mubr.f32.mxu1 %v2830_v0 }
  0xd2   : > { %483 = vmatmul.mubr.f32.gmra.mrb[34].mxu0 %v237_v11 }
  0xd3   : > { %740 = vmatmul.mubr.f32.gmra.mrb[34].mxu1 %v237_v11  ;;  %488 = vmatprep.mubr.f32.mxu0 %v2830_v0 }
  0xd4   : > { %745 = vmatprep.mubr.f32.mxu1 %v2830_v0 }
  0xd6   : > { %489 = vmatmul.mubr.f32.gmra.mrb[36].mxu0 %v238_v12 }
  0xd7   : > { %746 = vmatmul.mubr.f32.gmra.mrb[36].mxu1 %v238_v12  ;;  %494 = vmatprep.mubr.f32.mxu0 %v2830_v0 }
  0xd8   : > { %751 = vmatprep.mubr.f32.mxu1 %v2830_v0 }
  0xda   : > { %495 = vmatmul.mubr.f32.gmra.mrb[38].mxu0 %v239_v13 }
  0xdb   : > { %752 = vmatmul.mubr.f32.gmra.mrb[38].mxu1 %v239_v13  ;;  %500 = vmatprep.mubr.f32.mxu0 %v2830_v0 }
  0xdc   : > { %757 = vmatprep.mubr.f32.mxu1 %v2830_v0 }
  0xde   : > { %501 = vmatmul.mubr.f32.gmra.mrb[40].mxu0 %v240_v14 }
  0xdf   : > { %758 = vmatmul.mubr.f32.gmra.mrb[40].mxu1 %v240_v14  ;;  %506 = vmatprep.mubr.f32.mxu0 %v2830_v0 }
  0xe0   : > { %763 = vmatprep.mubr.f32.mxu1 %v2830_v0 }
  0xe2   : > { %507 = vmatmul.mubr.f32.gmra.mrb[42].mxu0 %v241_v15 }
  0xe3   : > { %764 = vmatmul.mubr.f32.gmra.mrb[42].mxu1 %v241_v15  ;;  %512 = vmatprep.mubr.f32.mxu0 %v2830_v0 }
  0xe4   : > { %769 = vmatprep.mubr.f32.mxu1 %v2830_v0 }
  0xe6   : > { %513 = vmatmul.mubr.f32.gmra.mrb[44].mxu0 %v242_v16 }
  0xe7   : > { %770 = vmatmul.mubr.f32.gmra.mrb[44].mxu1 %v242_v16  ;;  %518 = vmatprep.mubr.f32.mxu0 %v2830_v0 }
  0xe8   : > { %775 = vmatprep.mubr.f32.mxu1 %v2830_v0 }
  0xea   : > { %519 = vmatmul.mubr.f32.gmra.mrb[46].mxu0 %v243_v17 }
  0xeb   : > { %776 = vmatmul.mubr.f32.gmra.mrb[46].mxu1 %v243_v17  ;;  %524 = vmatprep.mubr.f32.mxu0 %v2830_v0 }
  0xec   : > { %781 = vmatprep.mubr.f32.mxu1 %v2830_v0 }
  0xee   : > { %525 = vmatmul.mubr.f32.gmra.mrb[48].mxu0 %v244_v18 }
  0xef   : > { %782 = vmatmul.mubr.f32.gmra.mrb[48].mxu1 %v244_v18  ;;  %530 = vmatprep.mubr.f32.mxu0 %v2830_v0 }
  0xf0   : > { %787 = vmatprep.mubr.f32.mxu1 %v2830_v0 }
  0xf2   : > { %531 = vmatmul.mubr.f32.gmra.mrb[50].mxu0 %v245_v24 }
  0xf3   : > { %788 = vmatmul.mubr.f32.gmra.mrb[50].mxu1 %v245_v24  ;;  %536 = vmatprep.mubr.f32.mxu0 %v2830_v0 }
  0xf4   : > { %793 = vmatprep.mubr.f32.mxu1 %v2830_v0 }
  0xf6   : > { %537 = vmatmul.mubr.f32.gmra.mrb[52].mxu0 %v246_v31 }
  0xf7   : > { %794 = vmatmul.mubr.f32.gmra.mrb[52].mxu1 %v246_v31  ;;  %542 = vmatprep.mubr.f32.mxu0 %v2830_v0 }
  0xf8   : > { %799 = vmatprep.mubr.f32.mxu1 %v2830_v0 }
  0xfa   : > { %543 = vmatmul.mubr.f32.gmra.mrb[54].mxu0 %v247_v33 }
  0xfb   : > { %800 = vmatmul.mubr.f32.gmra.mrb[54].mxu1 %v247_v33  ;;  %548 = vmatprep.mubr.f32.mxu0 %v2830_v0 }
  0xfc   : > { %805 = vmatprep.mubr.f32.mxu1 %v2830_v0 }
  0xfe   : > { %549 = vmatmul.mubr.f32.gmra.mrb[56].mxu0 %v248_v39 }
  0xff   : > { %806 = vmatmul.mubr.f32.gmra.mrb[56].mxu1 %v248_v39  ;;  %554 = vmatprep.mubr.f32.mxu0 %v2830_v0 }
 0x100   : > { %811 = vmatprep.mubr.f32.mxu1 %v2830_v0 }
 0x102   : > { %555 = vmatmul.mubr.f32.gmra.mrb[58].mxu0 %v249_v34 }
 0x103   : > { %812 = vmatmul.mubr.f32.gmra.mrb[58].mxu1 %v249_v34  ;;  %560 = vmatprep.mubr.f32.mxu0 %v2830_v0 }
 0x104   : > { %817 = vmatprep.mubr.f32.mxu1 %v2830_v0 }
 0x106   : > { %561 = vmatmul.mubr.f32.gmra.mrb[60].mxu0 %v250_v35 }
 0x107   : > { %818 = vmatmul.mubr.f32.gmra.mrb[60].mxu1 %v250_v35  ;;  %566 = vmatprep.mubr.f32.mxu0 %v2830_v0 }
 0x108   : > { %823 = vmatprep.mubr.f32.mxu1 %v2830_v0 }
 0x10a   : > { %567 = vmatmul.mubr.f32.gmra.mrb[62].mxu0 %v251_v36 }
 0x10b   : > { %824 = vmatmul.mubr.f32.gmra.mrb[62].mxu1 %v251_v36 }
 0x161   : > { %v382_v37 = vpop.f32.mrb[0].mxu0 }
 0x162   : > { %v958_v38 = vmul.f32 0.70710677, %v382_v37  ;;  %v639_v40 = vpop.f32.mrb[0].mxu1  ;;  %v384_v41 = vpop.f32.mrb[1].mxu0  ;;  %v830_v63 = vmul.f32 0.5, %v382_v37 }
 0x163   : > { %v960_v42 = vmul.f32 0.70710677, %v639_v40  ;;  %v959_v43 = vmul.f32 0.70710677, %v384_v41  ;;  %v641_v44 = vpop.f32.mrb[1].mxu1  ;;  %v832_v5 = vmul.f32 0.5, %v639_v40 }
 0x164   : > { %2409 = verf.f32 %v958_v38  ;;  %v961_v45 = vmul.f32 0.70710677, %v641_v44  ;;  %v831_v6 = vmul.f32 0.5, %v384_v41  ;;  %v833_v15 = vmul.f32 0.5, %v641_v44 }
 0x165   : > { %2411 = verf.f32 %v960_v42  ;;  %v388_v46 = vpop.f32.mrb[2].mxu0 }
 0x166   : > { %2413 = verf.f32 %v959_v43  ;;  %v962_v47 = vmul.f32 0.70710677, %v388_v46  ;;  %v645_v48 = vpop.f32.mrb[2].mxu1  ;;  %v390_v49 = vpop.f32.mrb[3].mxu0  ;;  %v834_v16 = vmul.f32 0.5, %v388_v46 }
 0x167   : > { %2415 = verf.f32 %v961_v45  ;;  %v964_v50 = vmul.f32 0.70710677, %v645_v48  ;;  %v3177_v0 = vpop.f32.mrb[3].mxu1  ;;  %v963_v51 = vmul.f32 0.70710677, %v390_v49  ;;  %v836_v20 = vmul.f32 0.5, %v645_v48 }
 0x168   : > { %2417 = verf.f32 %v962_v47  ;;  %v965_v52 = vmul.f32 0.70710677, %v3177_v0  ;;  %v835_v27 = vmul.f32 0.5, %v390_v49  ;;  %v837_v40 = vmul.f32 0.5, %v3177_v0 }
 0x169   : > { %2419 = verf.f32 %v964_v50  ;;  %v3180_v53 = vpop.f32.mrb[4].mxu0 }
 0x16a   : > { %2421 = verf.f32 %v963_v51  ;;  %v966_v54 = vmul.f32 0.70710677, %v3180_v53  ;;  %v3183_v55 = vpop.f32.mrb[4].mxu1  ;;  %v3185_v56 = vpop.f32.mrb[5].mxu0 }
 0x16b   : > { %2423 = verf.f32 %v965_v52  ;;  %v968_v57 = vmul.f32 0.70710677, %v3183_v55  ;;  %v3188_v58 = vpop.f32.mrb[5].mxu1  ;;  %v967_v59 = vmul.f32 0.70710677, %v3185_v56  ;;  %v839_v48 = vmul.f32 0.5, %v3185_v56 }
 0x16c   : > { %2425 = verf.f32 %v966_v54  ;;  %v969_v60 = vmul.f32 0.70710677, %v3188_v58 }
 0x16d   : > { %2427 = verf.f32 %v968_v57  ;;  %v3192_v61 = vpop.f32.mrb[6].mxu0 }
 0x16e   : > { %v2410_v62 = vpop.eup %2409  ;;  %2429 = verf.f32 %v967_v59  ;;  %v970_v1 = vmul.f32 0.70710677, %v3192_v61  ;;  %v3195_v2 = vpop.f32.mrb[6].mxu1 }
 0x16f   : > { %v3197_v3 = vpop.f32.mrb[7].mxu0  ;;  %v2412_v4 = vpop.eup %2411  ;;  %2431 = verf.f32 %v969_v60  ;;  %v972_v7 = vmul.f32 0.70710677, %v3195_v2  ;;  %v1214_v10 = vadd.f32 1.0, %v2410_v62 }
 0x170   : > { %v3200_v8 = vpop.f32.mrb[7].mxu1  ;;  %v2414_v9 = vpop.eup %2413  ;;  %v1216_v11 = vadd.f32 1.0, %v2412_v4  ;;  %2433 = verf.f32 %v970_v1  ;;  %v971_v12 = vmul.f32 0.70710677, %v3197_v3  ;;  %v838_v1 = vmul.f32 0.5, %v3180_v53 }
 0x171   : > { %v2416_v13 = vpop.eup %2415  ;;  %v1215_v14 = vadd.f32 1.0, %v2414_v9  ;;  %2435 = verf.f32 %v972_v7  ;;  %v3203_v17 = vpop.f32.mrb[8].mxu0  ;;  %v973_v21 = vmul.f32 0.70710677, %v3200_v8  ;;  %v1342_v31 = vmul.f32 %v1214_v10, %v830_v63 }
 0x172   : > { %v2418_v18 = vpop.eup %2417  ;;  %v1217_v19 = vadd.f32 1.0, %v2416_v13  ;;  %2437 = verf.f32 %v971_v12  ;;  %v3206_v22 = vpop.f32.mrb[8].mxu1  ;;  %v974_v28 = vmul.f32 0.70710677, %v3203_v17  ;;  %v1344_v32 = vmul.f32 %v1216_v11, %v832_v5 }
 0x173   : > { %v3208_v23 = vpop.f32.mrb[9].mxu0  ;;  %v2420_v24 = vpop.eup %2419  ;;  %v1343_v25 = vmul.f32 %v1215_v14, %v831_v6  ;;  %v1218_v26 = vadd.f32 1.0, %v2418_v18  ;;  %2439 = verf.f32 %v973_v21  ;;  %v976_v36 = vmul.f32 0.70710677, %v3206_v22 }
 0x174   : > { %v3211_v29 = vpop.f32.mrb[9].mxu1  ;;  %v2422_v30 = vpop.eup %2421  ;;  %v1345_v33 = vmul.f32 %v1217_v19, %v833_v15  ;;  %v1220_v34 = vadd.f32 1.0, %v2420_v24  ;;  %2441 = verf.f32 %v974_v28  ;;  %v975_v42 = vmul.f32 0.70710677, %v3208_v23 }
 0x175   : > { %v2424_v39 = vpop.eup %2423  ;;  %v1219_v35 = vadd.f32 1.0, %v2422_v30  ;;  %1598 = vmatprep.mubr.f32.mxu1 %v1343_v25  ;;  %v3214_v37 = vpop.f32.mrb[10].mxu0  ;;  %v1346_v46 = vmul.f32 %v1218_v26, %v834_v16  ;;  %2443 = verf.f32 %v976_v36  ;;  %v977_v52 = vmul.f32 0.70710677, %v3211_v29 }
 0x176   : > { %v2426_v38 = vpop.eup %2425  ;;  %v1221_v41 = vadd.f32 1.0, %v2424_v39  ;;  %1823 = vmatprep.mubr.f32.mxu0 %v1345_v33  ;;  %v3218_v43 = vpop.f32.mrb[10].mxu1  ;;  %1599 = vmatmul.mubr.f32.vlgmr.msra.gmra.mrb[64].mxu1 %v1342_v31  ;;  %2445 = verf.f32 %v975_v42  ;;  %v1348_v57 = vmul.f32 %v1220_v34, %v836_v20  ;;  %v978_v62 = vmul.f32 0.70710677, %v3214_v37 }
 0x177   : > { %v3220_v44 = vpop.f32.mrb[11].mxu0  ;;  %v2428_v45 = vpop.eup %2427  ;;  %v1347_v47 = vmul.f32 %v1219_v35, %v835_v27  ;;  %1824 = vmatmul.mubr.f32.vlgmr.msra.gmra.mrb[64].mxu0 %v1344_v32  ;;  %v1222_v51 = vadd.f32 1.0, %v2426_v38  ;;  %v841_v4 = vmul.f32 0.5, %v3188_v58  ;;  %2447 = verf.f32 %v977_v52 }
 0x178   : > { %v3223_v49 = vpop.f32.mrb[11].mxu1  ;;  %v2430_v50 = vpop.eup %2429  ;;  %v1349_v0 = vmul.f32 %v1221_v41, %v837_v40  ;;  %v1224_v59 = vadd.f32 1.0, %v2428_v45  ;;  %v840_v10 = vmul.f32 0.5, %v3183_v55  ;;  %2449 = verf.f32 %v978_v62 }
 0x179   : > { %v2432_v54 = vpop.eup %2431  ;;  %v1223_v60 = vadd.f32 1.0, %v2430_v50  ;;  %1603 = vmatprep.mubr.f32.mxu1 %v1347_v47  ;;  %v3227_v63 = vpop.f32.mrb[12].mxu0  ;;  %v980_v12 = vmul.f32 0.70710677, %v3218_v43  ;;  %v1350_v58 = vmul.f32 %v1222_v51, %v838_v1  ;;  %v979_v16 = vmul.f32 0.70710677, %v3220_v44 }
 0x17a   : > { %v2434_v56 = vpop.eup %2433  ;;  %v1225_v5 = vadd.f32 1.0, %v2432_v54  ;;  %1828 = vmatprep.mubr.f32.mxu0 %v1349_v0  ;;  %v3231_v6 = vpop.f32.mrb[12].mxu1  ;;  %1604 = vmatmul.mubr.f32.gmra.mrb[66].mxu1 %v1346_v46  ;;  %v1352_v18 = vmul.f32 %v1224_v59, %v840_v10  ;;  %v843_v19 = vmul.f32 0.5, %v3197_v3  ;;  %v842_v24 = vmul.f32 0.5, %v3192_v61 }
 0x17b   : > { %v3233_v7 = vpop.f32.mrb[13].mxu0  ;;  %v2436_v9 = vpop.eup %2435  ;;  %v1351_v11 = vmul.f32 %v1223_v60, %v839_v48  ;;  %1829 = vmatmul.mubr.f32.gmra.mrb[66].mxu0 %v1348_v57  ;;  %v1226_v15 = vadd.f32 1.0, %v2434_v56  ;;  %2451 = verf.f32 %v980_v12  ;;  %v981_v26 = vmul.f32 0.70710677, %v3223_v49 }
 0x17c   : > { %v3237_v13 = vpop.f32.mrb[13].mxu1  ;;  %v2438_v53 = vpop.eup %2437  ;;  %v1353_v14 = vmul.f32 %v1225_v5, %v841_v4  ;;  %v1228_v25 = vadd.f32 1.0, %v2436_v9  ;;  %2453 = verf.f32 %v979_v16  ;;  %v845_v31 = vmul.f32 0.5, %v3200_v8 }
 0x17d   : > { %v1227_v20 = vadd.f32 1.0, %v2438_v53  ;;  %1608 = vmatprep.mubr.f32.mxu1 %v1351_v11  ;;  %v3241_v55 = vpop.f32.mrb[14].mxu0  ;;  %v2440_v21 = vpop.eup %2439  ;;  %v982_v33 = vmul.f32 0.70710677, %v3227_v63  ;;  %v1354_v61 = vmul.f32 %v1226_v15, %v842_v24  ;;  %v844_v34 = vmul.f32 0.5, %v3195_v2 }
 0x17e   : > { %1833 = vmatprep.mubr.f32.mxu0 %v1353_v14  ;;  %v3245_v27 = vpop.f32.mrb[14].mxu1  ;;  %1609 = vmatmul.mubr.f32.gmra.mrb[68].mxu1 %v1350_v58  ;;  %v3247_v28 = vpop.f32.mrb[15].mxu0  ;;  %v1229_v32 = vadd.f32 1.0, %v2440_v21  ;;  %2455 = verf.f32 %v981_v26  ;;  %v984_v35 = vmul.f32 0.70710677, %v3231_v6  ;;  %v846_v40 = vmul.f32 0.5, %v3203_v17 }
 0x17f   : > { %v2442_v30 = vpop.eup %2441  ;;  %v1355_v3 = vmul.f32 %v1227_v20, %v843_v19  ;;  %1834 = vmatmul.mubr.f32.gmra.mrb[68].mxu0 %v1352_v18  ;;  %v3251_v39 = vpop.f32.mrb[15].mxu1  ;;  %2457 = verf.f32 %v982_v33  ;;  %v983_v41 = vmul.f32 0.70710677, %v3233_v7  ;;  %v1356_v45 = vmul.f32 %v1228_v25, %v844_v34 }
 0x180   : > { %v2444_v36 = vpop.eup %2443  ;;  %v1357_v38 = vmul.f32 %v1229_v32, %v845_v31  ;;  %v1230_v46 = vadd.f32 1.0, %v2442_v30  ;;  %2459 = verf.f32 %v984_v35  ;;  %v985_v47 = vmul.f32 0.70710677, %v3237_v13 }
 0x181   : > { %1613 = vmatprep.mubr.f32.mxu1 %v1355_v3  ;;  %v3257_v8 = vpop.f32.mrb[16].mxu0  ;;  %v2446_v42 = vpop.eup %2445  ;;  %v847_v50 = vmul.f32 0.5, %v3208_v23  ;;  %2461 = verf.f32 %v983_v41  ;;  %v986_v0 = vmul.f32 0.70710677, %v3241_v55  ;;  %v848_v54 = vmul.f32 0.5, %v3206_v22 }
 0x182   : > { %v3260_v2 = vpop.f32.mrb[16].mxu1  ;;  %1614 = vmatmul.mubr.f32.gmra.mrb[70].mxu1 %v1354_v61  ;;  %v3262_v48 = vpop.f32.mrb[17].mxu0  ;;  %v1231_v17 = vadd.f32 1.0, %v2446_v42  ;;  %1838 = vmatprep.mubr.f32.mxu0 %v1357_v38  ;;  %v1232_v57 = vadd.f32 1.0, %v2444_v36  ;;  %2463 = verf.f32 %v985_v47  ;;  %v988_v59 = vmul.f32 0.70710677, %v3245_v27 }
 0x183   : > { %v3266_v51 = vpop.f32.mrb[17].mxu1  ;;  %v2448_v52 = vpop.eup %2447  ;;  %1839 = vmatmul.mubr.f32.gmra.mrb[70].mxu0 %v1356_v45  ;;  %v849_v56 = vmul.f32 0.5, %v3211_v29  ;;  %2465 = verf.f32 %v986_v0  ;;  %v1358_v4 = vmul.f32 %v1230_v46, %v846_v40  ;;  %v850_v5 = vmul.f32 0.5, %v3214_v37 }
 0x184   : > { %v2450_v60 = vpop.eup %2449  ;;  %v1359_v62 = vmul.f32 %v1231_v17, %v847_v50  ;;  %v1233_v23 = vadd.f32 1.0, %v2448_v52  ;;  %2467 = verf.f32 %v988_v59  ;;  %v987_v9 = vmul.f32 0.70710677, %v3247_v28 }
 0x185   : > { %v3271_v1 = vpop.f32.mrb[18].mxu0  ;;  %v2452_v11 = vpop.eup %2451  ;;  %v852_v53 = vmul.f32 0.5, %v3218_v43  ;;  %v989_v29 = vmul.f32 0.70710677, %v3251_v39  ;;  %v990_v58 = vmul.f32 0.70710677, %v3257_v8  ;;  %v1360_v37 = vmul.f32 %v1232_v57, %v848_v54 }
 0x186   : > { %v3275_v22 = vpop.f32.mrb[18].mxu1  ;;  %v3277_v10 = vpop.f32.mrb[19].mxu0  ;;  %v1361_v12 = vmul.f32 %v1233_v23, %v849_v56  ;;  %1618 = vmatprep.mubr.f32.mxu1 %v1359_v62  ;;  %v1234_v16 = vadd.f32 1.0, %v2450_v60  ;;  %v851_v18 = vmul.f32 0.5, %v3220_v44  ;;  %2469 = verf.f32 %v987_v9 }
 0x187   : > { %v3282_v14 = vpop.f32.mrb[19].mxu1  ;;  %v2454_v15 = vpop.eup %2453  ;;  %1619 = vmatmul.mubr.f32.gmra.mrb[72].mxu1 %v1358_v4  ;;  %v1236_v19 = vadd.f32 1.0, %v2452_v11  ;;  %2471 = verf.f32 %v989_v29  ;;  %v992_v21 = vmul.f32 0.70710677, %v3260_v2  ;;  %v853_v25 = vmul.f32 0.5, %v3223_v49 }
 0x188   : > { %v1235_v20 = vadd.f32 1.0, %v2454_v15  ;;  %1843 = vmatprep.mubr.f32.mxu0 %v1361_v12  ;;  %v2456_v24 = vpop.eup %2455  ;;  %v854_v26 = vmul.f32 0.5, %v3227_v63  ;;  %2473 = verf.f32 %v990_v58  ;;  %v991_v30 = vmul.f32 0.70710677, %v3262_v48 }
 0x189   : > { %v3286_v43 = vpop.f32.mrb[20].mxu0  ;;  %1844 = vmatmul.mubr.f32.gmra.mrb[72].mxu0 %v1360_v37  ;;  %v2458_v31 = vpop.eup %2457  ;;  %v1237_v33 = vadd.f32 1.0, %v2456_v24  ;;  %2475 = verf.f32 %v992_v21  ;;  %v993_v61 = vmul.f32 0.70710677, %v3266_v51  ;;  %v1362_v49 = vmul.f32 %v1234_v16, %v850_v5 }
 0x18a   : > { %v3291_v44 = vpop.f32.mrb[20].mxu1  ;;  %v3293_v3 = vpop.f32.mrb[21].mxu0  ;;  %v1363_v32 = vmul.f32 %v1235_v20, %v851_v18  ;;  %v1238_v36 = vadd.f32 1.0, %v2458_v31  ;;  %2477 = verf.f32 %v991_v30  ;;  %v994_v63 = vmul.f32 0.70710677, %v3271_v1 }
 0x18b   : > { %v3296_v34 = vpop.f32.mrb[21].mxu1  ;;  %v2460_v35 = vpop.eup %2459  ;;  %v1364_v40 = vmul.f32 %v1236_v19, %v852_v53  ;;  %v1365_v41 = vmul.f32 %v1237_v33, %v853_v25  ;;  %v855_v42 = vmul.f32 0.5, %v3233_v7  ;;  %2479 = verf.f32 %v993_v61 }
 0x18c   : > { %v2462_v38 = vpop.eup %2461  ;;  %1623 = vmatprep.mubr.f32.mxu1 %v1363_v32  ;;  %v1240_v47 = vadd.f32 1.0, %v2460_v35  ;;  %2481 = verf.f32 %v994_v63  ;;  %v996_v17 = vmul.f32 0.70710677, %v3275_v22  ;;  %v856_v57 = vmul.f32 0.5, %v3231_v6 }
 0x18d   : > { %v3300_v45 = vpop.f32.mrb[22].mxu0  ;;  %v2464_v46 = vpop.eup %2463  ;;  %v1239_v50 = vadd.f32 1.0, %v2462_v38  ;;  %1624 = vmatmul.mubr.f32.gmra.mrb[74].mxu1 %v1362_v49  ;;  %v857_v7 = vmul.f32 0.5, %v3237_v13  ;;  %v995_v60 = vmul.f32 0.70710677, %v3277_v10  ;;  %1848 = vmatprep.mubr.f32.mxu0 %v1365_v41  ;;  %v1366_v23 = vmul.f32 %v1238_v36, %v854_v26 }
 0x18e   : > { %v3303_v0 = vpop.f32.mrb[22].mxu1  ;;  %v3305_v52 = vpop.f32.mrb[23].mxu0  ;;  %v1241_v59 = vadd.f32 1.0, %v2464_v46  ;;  %v858_v5 = vmul.f32 0.5, %v3241_v55  ;;  %2483 = verf.f32 %v996_v17  ;;  %1849 = vmatmul.mubr.f32.gmra.mrb[74].mxu0 %v1364_v40  ;;  %v997_v6 = vmul.f32 0.70710677, %v3282_v14 }
 0x18f   : > { %v2466_v54 = vpop.eup %2465  ;;  %v3310_v62 = vpop.f32.mrb[23].mxu1  ;;  %v1367_v4 = vmul.f32 %v1239_v50, %v855_v42  ;;  %2485 = verf.f32 %v995_v60  ;;  %v1368_v53 = vmul.f32 %v1240_v47, %v856_v57  ;;  %v860_v29 = vmul.f32 0.5, %v3245_v27 }
 0x190   : > { %v2468_v56 = vpop.eup %2467  ;;  %v1369_v9 = vmul.f32 %v1241_v59, %v857_v7  ;;  %v1242_v11 = vadd.f32 1.0, %v2466_v54  ;;  %v859_v58 = vmul.f32 0.5, %v3247_v28  ;;  %v998_v15 = vmul.f32 0.70710677, %v3286_v43 }
 0x191   : > { %v3314_v12 = vpop.f32.mrb[24].mxu0  ;;  %v2470_v13 = vpop.eup %2469  ;;  %1628 = vmatprep.mubr.f32.mxu1 %v1367_v4  ;;  %v1244_v18 = vadd.f32 1.0, %v2468_v56  ;;  %2487 = verf.f32 %v997_v6  ;;  %v1000_v20 = vmul.f32 0.70710677, %v3291_v44  ;;  %v861_v28 = vmul.f32 0.5, %v3251_v39 }
 0x192   : > { %v3319_v37 = vpop.f32.mrb[24].mxu1  ;;  %v3321_v55 = vpop.f32.mrb[25].mxu0  ;;  %v1243_v19 = vadd.f32 1.0, %v2470_v13  ;;  %1853 = vmatprep.mubr.f32.mxu0 %v1369_v9  ;;  %1629 = vmatmul.mubr.f32.gmra.mrb[76].mxu1 %v1366_v23  ;;  %2489 = verf.f32 %v998_v15  ;;  %v999_v25 = vmul.f32 0.70710677, %v3293_v3  ;;  %v1370_v30 = vmul.f32 %v1242_v11, %v858_v5 }
 0x193   : > { %v2472_v16 = vpop.eup %2471  ;;  %v3324_v21 = vpop.f32.mrb[25].mxu1  ;;  %1854 = vmatmul.mubr.f32.gmra.mrb[76].mxu0 %v1368_v53  ;;  %v863_v32 = vmul.f32 0.5, %v3262_v48  ;;  %2491 = verf.f32 %v1000_v20  ;;  %v1001_v36 = vmul.f32 0.70710677, %v3296_v34  ;;  %v1372_v40 = vmul.f32 %v1244_v18, %v860_v29 }
 0x194   : > { %v2474_v27 = vpop.eup %2473  ;;  %v1245_v24 = vadd.f32 1.0, %v2472_v16  ;;  %v1371_v31 = vmul.f32 %v1243_v19, %v859_v58  ;;  %2493 = verf.f32 %v999_v25  ;;  %v1002_v46 = vmul.f32 0.70710677, %v3300_v45 }
 0x195   : > { %v2476_v26 = vpop.eup %2475  ;;  %v3329_v33 = vpop.f32.mrb[26].mxu0  ;;  %v1246_v49 = vadd.f32 1.0, %v2474_v27  ;;  %v862_v50 = vmul.f32 0.5, %v3257_v8  ;;  %v865_v17 = vmul.f32 0.5, %v3266_v51  ;;  %2495 = verf.f32 %v1001_v36 }
 0x196   : > { %v2478_v61 = vpop.eup %2477  ;;  %v1373_v35 = vmul.f32 %v1245_v24, %v861_v28  ;;  %v3332_v39 = vpop.f32.mrb[26].mxu1  ;;  %v1248_v41 = vadd.f32 1.0, %v2476_v26  ;;  %1633 = vmatprep.mubr.f32.mxu1 %v1371_v31  ;;  %v864_v57 = vmul.f32 0.5, %v3260_v2  ;;  %2497 = verf.f32 %v1002_v46 }
 0x197   : > { %v3334_v63 = vpop.f32.mrb[27].mxu0  ;;  %v2480_v38 = vpop.eup %2479  ;;  %v1247_v42 = vadd.f32 1.0, %v2478_v61  ;;  %1634 = vmatmul.mubr.f32.gmra.mrb[78].mxu1 %v1370_v30  ;;  %v1004_v59 = vmul.f32 0.70710677, %v3303_v0  ;;  %v1374_v23 = vmul.f32 %v1246_v49, %v862_v50  ;;  %v1003_v8 = vmul.f32 0.70710677, %v3305_v52 }
 0x198   : > { %v3337_v48 = vpop.f32.mrb[27].mxu1  ;;  %v2482_v47 = vpop.eup %2481  ;;  %v1249_v54 = vadd.f32 1.0, %v2480_v38  ;;  %1858 = vmatprep.mubr.f32.mxu0 %v1373_v35  ;;  %v1376_v11 = vmul.f32 %v1248_v41, %v864_v57  ;;  %v1005_v2 = vmul.f32 0.70710677, %v3310_v62  ;;  %v867_v53 = vmul.f32 0.5, %v3277_v10 }
 0x199   : > { %v1375_v7 = vmul.f32 %v1247_v42, %v863_v32  ;;  %1859 = vmatmul.mubr.f32.gmra.mrb[78].mxu0 %v1372_v40  ;;  %v3343_v60 = vpop.f32.mrb[28].mxu0  ;;  %v2484_v56 = vpop.eup %2483  ;;  %v1250_v6 = vadd.f32 1.0, %v2482_v47  ;;  %2499 = verf.f32 %v1004_v59  ;;  %v1006_v58 = vmul.f32 0.70710677, %v3314_v12 }
 0x19a   : > { %v1377_v4 = vmul.f32 %v1249_v54, %v865_v17  ;;  %v3346_v5 = vpop.f32.mrb[28].mxu1  ;;  %v3348_v51 = vpop.f32.mrb[29].mxu0  ;;  %2501 = verf.f32 %v1003_v8  ;;  %v866_v16 = vmul.f32 0.5, %v3271_v1  ;;  %v1252_v18 = vadd.f32 1.0, %v2484_v56 }
 0x19b   : > { %v2486_v9 = vpop.eup %2485  ;;  %1638 = vmatprep.mubr.f32.mxu1 %v1375_v7  ;;  %v3351_v13 = vpop.f32.mrb[29].mxu1  ;;  %2503 = verf.f32 %v1005_v2  ;;  %v1008_v19 = vmul.f32 0.70710677, %v3319_v37  ;;  %v869_v10 = vmul.f32 0.5, %v3282_v14  ;;  %v868_v1 = vmul.f32 0.5, %v3275_v22 }
 0x19c   : > { %v1251_v29 = vadd.f32 1.0, %v2486_v9  ;;  %1863 = vmatprep.mubr.f32.mxu0 %v1377_v4  ;;  %1639 = vmatmul.mubr.f32.gmra.mrb[80].mxu1 %v1374_v23  ;;  %v2488_v15 = vpop.eup %2487  ;;  %2505 = verf.f32 %v1006_v58  ;;  %v1378_v31 = vmul.f32 %v1250_v6, %v866_v16  ;;  %v1007_v32 = vmul.f32 0.70710677, %v3321_v55 }
 0x19d   : > { %1864 = vmatmul.mubr.f32.gmra.mrb[80].mxu0 %v1376_v11  ;;  %v3357_v20 = vpop.f32.mrb[30].mxu0  ;;  %v2490_v27 = vpop.eup %2489  ;;  %v1253_v24 = vadd.f32 1.0, %v2488_v15  ;;  %2507 = verf.f32 %v1008_v19  ;;  %v871_v14 = vmul.f32 0.5, %v3293_v3  ;;  %v1009_v38 = vmul.f32 0.70710677, %v3324_v21 }
 0x19e   : > { %v1379_v28 = vmul.f32 %v1251_v29, %v867_v53  ;;  %v3360_v25 = vpop.f32.mrb[30].mxu1  ;;  %v3362_v26 = vpop.f32.mrb[31].mxu0  ;;  %v1254_v36 = vadd.f32 1.0, %v2490_v27  ;;  %v1380_v40 = vmul.f32 %v1252_v18, %v868_v1  ;;  %2509 = verf.f32 %v1007_v32 }
 0x19f   : > { %v2492_v30 = vpop.eup %2491  ;;  %v3366_v61 = vpop.f32.mrb[31].mxu1  ;;  %v1381_v49 = vmul.f32 %v1253_v24, %v869_v10  ;;  %v1010_v42 = vmul.f32 0.70710677, %v3329_v33  ;;  %v870_v47 = vmul.f32 0.5, %v3286_v43  ;;  %2511 = verf.f32 %v1009_v38 }
 0x1a0   : > { %v2494_v35 = vpop.eup %2493  ;;  %1643 = vmatprep.mubr.f32.mxu1 %v1379_v28  ;;  %v1256_v50 = vadd.f32 1.0, %v2492_v30  ;;  %v1012_v17 = vmul.f32 0.70710677, %v3332_v39  ;;  %v873_v59 = vmul.f32 0.5, %v3296_v34  ;;  %v872_v43 = vmul.f32 0.5, %v3291_v44 }
 0x1a1   : > { %v1255_v41 = vadd.f32 1.0, %v2494_v35  ;;  %1644 = vmatmul.mubr.f32.gmra.mrb[82].mxu1 %v1378_v31  ;;  %v3371_v22 = vpop.f32.mrb[32].mxu0  ;;  %v2496_v46 = vpop.eup %2495  ;;  %1868 = vmatprep.mubr.f32.mxu0 %v1381_v49  ;;  %2513 = verf.f32 %v1010_v42  ;;  %v1382_v4 = vmul.f32 %v1254_v36, %v870_v47  ;;  %v1011_v8 = vmul.f32 0.70710677, %v3334_v63 }
 0x1a2   : > { %v3375_v3 = vpop.f32.mrb[32].mxu1  ;;  %v3377_v54 = vpop.f32.mrb[33].mxu0  ;;  %v1257_v56 = vadd.f32 1.0, %v2496_v46  ;;  %1869 = vmatmul.mubr.f32.gmra.mrb[82].mxu0 %v1380_v40  ;;  %2515 = verf.f32 %v1012_v17  ;;  %v1013_v2 = vmul.f32 0.70710677, %v3337_v48  ;;  %v1384_v58 = vmul.f32 %v1256_v50, %v872_v43 }
 0x1a3   : > { %v2498_v57 = vpop.eup %2497  ;;  %v1383_v7 = vmul.f32 %v1255_v41, %v871_v14  ;;  %v3380_v23 = vpop.f32.mrb[33].mxu1  ;;  %v1014_v53 = vmul.f32 0.70710677, %v3343_v60  ;;  %v874_v15 = vmul.f32 0.5, %v3300_v45  ;;  %v875_v16 = vmul.f32 0.5, %v3305_v52 }
 0x1a4   : > { %v2500_v9 = vpop.eup %2499  ;;  %v1385_v11 = vmul.f32 %v1257_v56, %v873_v59  ;;  %v1258_v6 = vadd.f32 1.0, %v2498_v57  ;;  %2517 = verf.f32 %v1011_v8  ;;  %v1016_v10 = vmul.f32 0.70710677, %v3346_v5 }
 0x1a5   : > { %1648 = vmatprep.mubr.f32.mxu1 %v1383_v7  ;;  %v3386_v34 = vpop.f32.mrb[34].mxu0  ;;  %v2502_v29 = vpop.eup %2501  ;;  %v1260_v27 = vadd.f32 1.0, %v2500_v9  ;;  %2519 = verf.f32 %v1013_v2  ;;  %v877_v45 = vmul.f32 0.5, %v3310_v62  ;;  %v1015_v52 = vmul.f32 0.70710677, %v3348_v51 }
 0x1a6   : > { %1649 = vmatmul.mubr.f32.gmra.mrb[84].mxu1 %v1382_v4  ;;  %v3390_v44 = vpop.f32.mrb[34].mxu1  ;;  %v3392_v18 = vpop.f32.mrb[35].mxu0  ;;  %v1259_v28 = vadd.f32 1.0, %v2502_v29  ;;  %1873 = vmatprep.mubr.f32.mxu0 %v1385_v11  ;;  %2521 = verf.f32 %v1014_v53  ;;  %v1386_v32 = vmul.f32 %v1258_v6, %v874_v15  ;;  %v876_v35 = vmul.f32 0.5, %v3303_v0 }
 0x1a7   : > { %v2504_v19 = vpop.eup %2503  ;;  %v3395_v24 = vpop.f32.mrb[35].mxu1  ;;  %1874 = vmatmul.mubr.f32.gmra.mrb[84].mxu0 %v1384_v58  ;;  %2523 = verf.f32 %v1016_v10  ;;  %v1017_v40 = vmul.f32 0.70710677, %v3351_v13  ;;  %v878_v47 = vmul.f32 0.5, %v3314_v12  ;;  %v879_v50 = vmul.f32 0.5, %v3321_v55 }
 0x1a8   : > { %v2506_v30 = vpop.eup %2505  ;;  %v1261_v31 = vadd.f32 1.0, %v2504_v19  ;;  %v1387_v49 = vmul.f32 %v1259_v28, %v875_v16  ;;  %2525 = verf.f32 %v1015_v52  ;;  %v1388_v46 = vmul.f32 %v1260_v27, %v876_v35 }
 0x1a9   : > { %v2508_v1 = vpop.eup %2507  ;;  %v3400_v36 = vpop.f32.mrb[36].mxu0  ;;  %v1262_v38 = vadd.f32 1.0, %v2506_v30  ;;  %v1018_v0 = vmul.f32 0.70710677, %v3357_v20  ;;  %2527 = verf.f32 %v1017_v40  ;;  %v1020_v56 = vmul.f32 0.70710677, %v3360_v25 }
 0x1aa   : > { %v1389_v14 = vmul.f32 %v1261_v31, %v877_v45  ;;  %v3403_v41 = vpop.f32.mrb[36].mxu1  ;;  %v3405_v62 = vpop.f32.mrb[37].mxu0  ;;  %1653 = vmatprep.mubr.f32.mxu1 %v1387_v49  ;;  %v1264_v7 = vadd.f32 1.0, %v2508_v1  ;;  %v881_v43 = vmul.f32 0.5, %v3324_v21  ;;  %v1019_v12 = vmul.f32 0.70710677, %v3362_v26 }
 0x1ab   : > { %v2510_v42 = vpop.eup %2509  ;;  %v3410_v17 = vpop.f32.mrb[37].mxu1  ;;  %1654 = vmatmul.mubr.f32.gmra.mrb[86].mxu1 %v1386_v32  ;;  %2529 = verf.f32 %v1018_v0  ;;  %v1390_v11 = vmul.f32 %v1262_v38, %v878_v47  ;;  %v880_v6 = vmul.f32 0.5, %v3319_v37  ;;  %v1021_v21 = vmul.f32 0.70710677, %v3366_v61 }
 0x1ac   : > { %v2512_v57 = vpop.eup %2511  ;;  %v1263_v59 = vadd.f32 1.0, %v2510_v42  ;;  %1878 = vmatprep.mubr.f32.mxu0 %v1389_v14  ;;  %2531 = verf.f32 %v1020_v56  ;;  %v882_v28 = vmul.f32 0.5, %v3329_v33  ;;  %v883_v10 = vmul.f32 0.5, %v3334_v63 }
 0x1ad   : > { %v2514_v4 = vpop.eup %2513  ;;  %v1265_v8 = vadd.f32 1.0, %v2512_v57  ;;  %1879 = vmatmul.mubr.f32.gmra.mrb[86].mxu0 %v1388_v46  ;;  %v3415_v55 = vpop.f32.mrb[38].mxu0  ;;  %2533 = verf.f32 %v1019_v12  ;;  %v1392_v27 = vmul.f32 %v1264_v7, %v880_v6  ;;  %v1022_v37 = vmul.f32 0.70710677, %v3371_v22 }
 0x1ae   : > { %v2516_v9 = vpop.eup %2515  ;;  %v1391_v2 = vmul.f32 %v1263_v59, %v879_v50  ;;  %v3418_v53 = vpop.f32.mrb[38].mxu1  ;;  %v1266_v15 = vadd.f32 1.0, %v2514_v4  ;;  %2535 = verf.f32 %v1021_v21  ;;  %v1024_v52 = vmul.f32 0.70710677, %v3375_v3 }
 0x1af   : > { %v3420_v29 = vpop.f32.mrb[39].mxu0  ;;  %v1393_v58 = vmul.f32 %v1265_v8, %v881_v43  ;;  %v3423_v16 = vpop.f32.mrb[39].mxu1  ;;  %v1268_v45 = vadd.f32 1.0, %v2516_v9  ;;  %v885_v35 = vmul.f32 0.5, %v3337_v48  ;;  %2537 = verf.f32 %v1022_v37 }
 0x1b0   : > { %v2518_v19 = vpop.eup %2517  ;;  %1658 = vmatprep.mubr.f32.mxu1 %v1391_v2  ;;  %v1023_v33 = vmul.f32 0.70710677, %v3377_v54  ;;  %v1394_v40 = vmul.f32 %v1266_v15, %v882_v28  ;;  %v884_v42 = vmul.f32 0.5, %v3332_v39  ;;  %2539 = verf.f32 %v1024_v52 }
 0x1b1   : > { %v2520_v30 = vpop.eup %2519  ;;  %v1267_v31 = vadd.f32 1.0, %v2518_v19  ;;  %1883 = vmatprep.mubr.f32.mxu0 %v1393_v58  ;;  %1659 = vmatmul.mubr.f32.gmra.mrb[88].mxu1 %v1390_v11  ;;  %v3429_v1 = vpop.f32.mrb[40].mxu0  ;;  %v1025_v57 = vmul.f32 0.70710677, %v3380_v23  ;;  %v887_v59 = vmul.f32 0.5, %v3348_v51  ;;  %v886_v8 = vmul.f32 0.5, %v3343_v60 }
 0x1b2   : > { %v2522_v32 = vpop.eup %2521  ;;  %v1269_v49 = vadd.f32 1.0, %v2520_v30  ;;  %1884 = vmatmul.mubr.f32.gmra.mrb[88].mxu0 %v1392_v27  ;;  %v3433_v63 = vpop.f32.mrb[40].mxu1  ;;  %2541 = verf.f32 %v1023_v33  ;;  %v1396_v7 = vmul.f32 %v1268_v45, %v884_v42  ;;  %v1026_v4 = vmul.f32 0.70710677, %v3386_v34 }
 0x1b3   : > { %v3435_v14 = vpop.f32.mrb[41].mxu0  ;;  %v2524_v38 = vpop.eup %2523  ;;  %v1395_v46 = vmul.f32 %v1267_v31, %v883_v10  ;;  %v1270_v48 = vadd.f32 1.0, %v2522_v32  ;;  %2543 = verf.f32 %v1025_v57  ;;  %v1028_v9 = vmul.f32 0.70710677, %v3390_v44 }
 0x1b4   : > { %v3438_v47 = vpop.f32.mrb[41].mxu1  ;;  %v2526_v50 = vpop.eup %2525  ;;  %v1397_v0 = vmul.f32 %v1269_v49, %v885_v35  ;;  %v1272_v12 = vadd.f32 1.0, %v2524_v38  ;;  %v889_v58 = vmul.f32 0.5, %v3351_v13  ;;  %2545 = verf.f32 %v1026_v4 }
 0x1b5   : > { %v1271_v56 = vadd.f32 1.0, %v2526_v50  ;;  %1663 = vmatprep.mubr.f32.mxu1 %v1395_v46  ;;  %v3443_v43 = vpop.f32.mrb[42].mxu0  ;;  %v2528_v39 = vpop.eup %2527  ;;  %v1398_v19 = vmul.f32 %v1270_v48, %v886_v8  ;;  %v888_v27 = vmul.f32 0.5, %v3346_v5  ;;  %2547 = verf.f32 %v1028_v9 }
 0x1b6   : > { %1888 = vmatprep.mubr.f32.mxu0 %v1397_v0  ;;  %1664 = vmatmul.mubr.f32.gmra.mrb[90].mxu1 %v1394_v40  ;;  %v3447_v11 = vpop.f32.mrb[42].mxu1  ;;  %v3449_v6 = vpop.f32.mrb[43].mxu0  ;;  %v1273_v15 = vadd.f32 1.0, %v2528_v39  ;;  %v1027_v28 = vmul.f32 0.70710677, %v3392_v18  ;;  %v891_v45 = vmul.f32 0.5, %v3362_v26 }
 0x1b7   : > { %v2530_v51 = vpop.eup %2529  ;;  %v1399_v2 = vmul.f32 %v1271_v56, %v887_v59  ;;  %1889 = vmatmul.mubr.f32.gmra.mrb[90].mxu0 %v1396_v7  ;;  %v3452_v21 = vpop.f32.mrb[43].mxu1  ;;  %v1029_v31 = vmul.f32 0.70710677, %v3395_v24  ;;  %v1400_v52 = vmul.f32 %v1272_v12, %v888_v27  ;;  %v1030_v35 = vmul.f32 0.70710677, %v3400_v36 }
 0x1b8   : > { %v2532_v60 = vpop.eup %2531  ;;  %v1401_v37 = vmul.f32 %v1273_v15, %v889_v58  ;;  %v1274_v30 = vadd.f32 1.0, %v2530_v51  ;;  %2549 = verf.f32 %v1027_v28  ;;  %v890_v38 = vmul.f32 0.5, %v3357_v20 }
 0x1b9   : > { %v2534_v10 = vpop.eup %2533  ;;  %1668 = vmatprep.mubr.f32.mxu1 %v1399_v2  ;;  %v3458_v13 = vpop.f32.mrb[44].mxu0  ;;  %v1276_v40 = vadd.f32 1.0, %v2532_v60  ;;  %2551 = verf.f32 %v1029_v31  ;;  %v1032_v26 = vmul.f32 0.70710677, %v3403_v41  ;;  %v893_v0 = vmul.f32 0.5, %v3366_v61 }
 0x1ba   : > { %v1275_v32 = vadd.f32 1.0, %v2534_v10  ;;  %1669 = vmatmul.mubr.f32.gmra.mrb[92].mxu1 %v1398_v19  ;;  %v3461_v5 = vpop.f32.mrb[44].mxu1  ;;  %v3463_v49 = vpop.f32.mrb[45].mxu0  ;;  %1893 = vmatprep.mubr.f32.mxu0 %v1401_v37  ;;  %2553 = verf.f32 %v1030_v35  ;;  %v1402_v7 = vmul.f32 %v1274_v30, %v890_v38  ;;  %v892_v59 = vmul.f32 0.5, %v3360_v25 }
 0x1bb   : > { %v2536_v33 = vpop.eup %2535  ;;  %v3467_v42 = vpop.f32.mrb[45].mxu1  ;;  %1894 = vmatmul.mubr.f32.gmra.mrb[92].mxu0 %v1400_v52  ;;  %2555 = verf.f32 %v1032_v26  ;;  %v1031_v20 = vmul.f32 0.70710677, %v3405_v62  ;;  %v895_v12 = vmul.f32 0.5, %v3377_v54  ;;  %v1033_v9 = vmul.f32 0.70710677, %v3410_v17 }
 0x1bc   : > { %v2538_v46 = vpop.eup %2537  ;;  %v1403_v50 = vmul.f32 %v1275_v32, %v891_v45  ;;  %v1277_v48 = vadd.f32 1.0, %v2536_v33  ;;  %v1404_v2 = vmul.f32 %v1276_v40, %v892_v59  ;;  %v1034_v25 = vmul.f32 0.70710677, %v3415_v55 }
 0x1bd   : > { %v2540_v57 = vpop.eup %2539  ;;  %v3472_v56 = vpop.f32.mrb[46].mxu0  ;;  %v1278_v8 = vadd.f32 1.0, %v2538_v46  ;;  %2557 = verf.f32 %v1031_v20  ;;  %v894_v19 = vmul.f32 0.5, %v3371_v22  ;;  %v1036_v54 = vmul.f32 0.70710677, %v3418_v53 }
 0x1be   : > { %v2542_v4 = vpop.eup %2541  ;;  %v1405_v39 = vmul.f32 %v1277_v48, %v893_v0  ;;  %1673 = vmatprep.mubr.f32.mxu1 %v1403_v50  ;;  %v3476_v61 = vpop.f32.mrb[46].mxu1  ;;  %v1280_v27 = vadd.f32 1.0, %v2540_v57  ;;  %2559 = verf.f32 %v1033_v9  ;;  %v897_v37 = vmul.f32 0.5, %v3380_v23 }
 0x1bf   : > { %v3478_v51 = vpop.f32.mrb[47].mxu0  ;;  %v1279_v58 = vadd.f32 1.0, %v2542_v4  ;;  %1674 = vmatmul.mubr.f32.gmra.mrb[94].mxu1 %v1402_v7  ;;  %v3481_v15 = vpop.f32.mrb[47].mxu1  ;;  %2561 = verf.f32 %v1034_v25  ;;  %v1406_v52 = vmul.f32 %v1278_v8, %v894_v19  ;;  %v896_v32 = vmul.f32 0.5, %v3375_v3 }
 0x1c0   : > { %v2544_v60 = vpop.eup %2543  ;;  %1898 = vmatprep.mubr.f32.mxu0 %v1405_v39  ;;  %2563 = verf.f32 %v1036_v54  ;;  %v1035_v22 = vmul.f32 0.70710677, %v3420_v29  ;;  %v898_v40 = vmul.f32 0.5, %v3386_v34  ;;  %v1037_v26 = vmul.f32 0.70710677, %v3423_v16 }
 0x1c1   : > { %v2546_v28 = vpop.eup %2545  ;;  %v1407_v10 = vmul.f32 %v1279_v58, %v895_v12  ;;  %v1281_v30 = vadd.f32 1.0, %v2544_v60  ;;  %1899 = vmatmul.mubr.f32.gmra.mrb[94].mxu0 %v1404_v2  ;;  %v3486_v45 = vpop.f32.mrb[48].mxu0  ;;  %v1408_v0 = vmul.f32 %v1280_v27, %v896_v32  ;;  %v899_v3 = vmul.f32 0.5, %v3392_v18 }
 0x1c2   : > { %v2548_v31 = vpop.eup %2547  ;;  %v3490_v35 = vpop.f32.mrb[48].mxu1  ;;  %v1282_v23 = vadd.f32 1.0, %v2546_v28  ;;  %2565 = verf.f32 %v1035_v22  ;;  %v1038_v48 = vmul.f32 0.70710677, %v3429_v1  ;;  %v1040_v34 = vmul.f32 0.70710677, %v3433_v63 }
 0x1c3   : > { %v3492_v33 = vpop.f32.mrb[49].mxu0  ;;  %v1409_v38 = vmul.f32 %v1281_v30, %v897_v37  ;;  %1678 = vmatprep.mubr.f32.mxu1 %v1407_v10  ;;  %v3496_v46 = vpop.f32.mrb[49].mxu1  ;;  %v1284_v7 = vadd.f32 1.0, %v2548_v31  ;;  %2567 = verf.f32 %v1037_v26  ;;  %v901_v39 = vmul.f32 0.5, %v3395_v24 }
 0x1c4   : > { %v2550_v50 = vpop.eup %2549  ;;  %1679 = vmatmul.mubr.f32.gmra.mrb[96].mxu1 %v1406_v52  ;;  %2569 = verf.f32 %v1038_v48  ;;  %v1039_v18 = vmul.f32 0.70710677, %v3435_v14  ;;  %v1410_v58 = vmul.f32 %v1282_v23, %v898_v40  ;;  %v900_v25 = vmul.f32 0.5, %v3390_v44 }
 0x1c5   : > { %v2552_v57 = vpop.eup %2551  ;;  %v1283_v59 = vadd.f32 1.0, %v2550_v50  ;;  %1903 = vmatprep.mubr.f32.mxu0 %v1409_v38  ;;  %v3501_v20 = vpop.f32.mrb[50].mxu0  ;;  %2571 = verf.f32 %v1040_v34  ;;  %v1041_v24 = vmul.f32 0.70710677, %v3438_v47  ;;  %v902_v37 = vmul.f32 0.5, %v3400_v36 }
 0x1c6   : > { %v2554_v4 = vpop.eup %2553  ;;  %v1285_v8 = vadd.f32 1.0, %v2552_v57  ;;  %1904 = vmatmul.mubr.f32.gmra.mrb[96].mxu0 %v1408_v0  ;;  %v3505_v12 = vpop.f32.mrb[50].mxu1  ;;  %2573 = verf.f32 %v1039_v18  ;;  %v1412_v10 = vmul.f32 %v1284_v7, %v900_v25  ;;  %v903_v30 = vmul.f32 0.5, %v3405_v62 }
 0x1c7   : > { %v3507_v9 = vpop.f32.mrb[51].mxu0  ;;  %v2556_v2 = vpop.eup %2555  ;;  %v1411_v60 = vmul.f32 %v1283_v59, %v899_v3  ;;  %v1286_v54 = vadd.f32 1.0, %v2554_v4  ;;  %v1042_v31 = vmul.f32 0.70710677, %v3443_v43  ;;  %2575 = verf.f32 %v1041_v24 }
 0x1c8   : > { %v3510_v19 = vpop.f32.mrb[51].mxu1  ;;  %v1413_v27 = vmul.f32 %v1285_v8, %v901_v39  ;;  %v2558_v28 = vpop.eup %2557  ;;  %v1288_v32 = vadd.f32 1.0, %v2556_v2  ;;  %v1044_v38 = vmul.f32 0.70710677, %v3447_v11  ;;  %v905_v62 = vmul.f32 0.5, %v3410_v17 }
 0x1c9   : > { %1683 = vmatprep.mubr.f32.mxu1 %v1411_v60  ;;  %v3516_v52 = vpop.f32.mrb[52].mxu0  ;;  %v2560_v44 = vpop.eup %2559  ;;  %v1287_v22 = vadd.f32 1.0, %v2558_v28  ;;  %2577 = verf.f32 %v1042_v31  ;;  %v1043_v50 = vmul.f32 0.70710677, %v3449_v6  ;;  %v1414_v48 = vmul.f32 %v1286_v54, %v902_v37 }
 0x1ca   : > { %1908 = vmatprep.mubr.f32.mxu0 %v1413_v27  ;;  %1684 = vmatmul.mubr.f32.gmra.mrb[98].mxu1 %v1410_v58  ;;  %v3519_v40 = vpop.f32.mrb[52].mxu1  ;;  %v3521_v23 = vpop.f32.mrb[53].mxu0  ;;  %v1289_v26 = vadd.f32 1.0, %v2560_v44  ;;  %v904_v57 = vmul.f32 0.5, %v3403_v41  ;;  %2579 = verf.f32 %v1044_v38  ;;  %v1045_v4 = vmul.f32 0.70710677, %v3452_v21 }
 0x1cb   : > { %v2562_v36 = vpop.eup %2561  ;;  %1909 = vmatmul.mubr.f32.gmra.mrb[98].mxu0 %v1412_v10  ;;  %v3525_v0 = vpop.f32.mrb[53].mxu1  ;;  %v1415_v7 = vmul.f32 %v1287_v22, %v903_v30  ;;  %2581 = verf.f32 %v1043_v50  ;;  %v906_v18 = vmul.f32 0.5, %v3415_v55  ;;  %v907_v2 = vmul.f32 0.5, %v3420_v29 }
 0x1cc   : > { %v2564_v3 = vpop.eup %2563  ;;  %v1417_v59 = vmul.f32 %v1289_v26, %v905_v62  ;;  %v1290_v34 = vadd.f32 1.0, %v2562_v36  ;;  %v1416_v8 = vmul.f32 %v1288_v32, %v904_v57  ;;  %v1046_v58 = vmul.f32 0.70710677, %v3458_v13 }
 0x1cd   : > { %v3529_v39 = vpop.f32.mrb[54].mxu0  ;;  %v2566_v17 = vpop.eup %2565  ;;  %1688 = vmatprep.mubr.f32.mxu1 %v1415_v7  ;;  %v1292_v27 = vadd.f32 1.0, %v2564_v3  ;;  %2583 = verf.f32 %v1045_v4  ;;  %v1048_v24 = vmul.f32 0.70710677, %v3461_v5  ;;  %v909_v29 = vmul.f32 0.5, %v3423_v16 }
 0x1ce   : > { %v3534_v25 = vpop.f32.mrb[54].mxu1  ;;  %v3536_v41 = vpop.f32.mrb[55].mxu0  ;;  %v1291_v54 = vadd.f32 1.0, %v2566_v17  ;;  %1913 = vmatprep.mubr.f32.mxu0 %v1417_v59  ;;  %1689 = vmatmul.mubr.f32.gmra.mrb[100].mxu1 %v1414_v48  ;;  %2585 = verf.f32 %v1046_v58  ;;  %v1047_v37 = vmul.f32 0.70710677, %v3463_v49  ;;  %v1418_v31 = vmul.f32 %v1290_v34, %v906_v18 }
 0x1cf   : > { %v2568_v60 = vpop.eup %2567  ;;  %v3539_v28 = vpop.f32.mrb[55].mxu1  ;;  %1914 = vmatmul.mubr.f32.gmra.mrb[100].mxu0 %v1416_v8  ;;  %v908_v44 = vmul.f32 0.5, %v3418_v53  ;;  %2587 = verf.f32 %v1048_v24  ;;  %v1049_v26 = vmul.f32 0.70710677, %v3467_v42  ;;  %v911_v48 = vmul.f32 0.5, %v3435_v14 }
 0x1d0   : > { %v2570_v55 = vpop.eup %2569  ;;  %v1293_v10 = vadd.f32 1.0, %v2568_v60  ;;  %v1419_v32 = vmul.f32 %v1291_v54, %v907_v2  ;;  %2589 = verf.f32 %v1047_v37  ;;  %v1050_v53 = vmul.f32 0.70710677, %v3472_v56 }
 0x1d1   : > { %v2572_v30 = vpop.eup %2571  ;;  %v3544_v22 = vpop.f32.mrb[56].mxu0  ;;  %v1294_v62 = vadd.f32 1.0, %v2570_v55  ;;  %v1420_v3 = vmul.f32 %v1292_v27, %v908_v44  ;;  %v910_v34 = vmul.f32 0.5, %v3429_v1  ;;  %2591 = verf.f32 %v1049_v26 }
 0x1d2   : > { %v2574_v38 = vpop.eup %2573  ;;  %v1421_v36 = vmul.f32 %v1293_v10, %v909_v29  ;;  %v3547_v16 = vpop.f32.mrb[56].mxu1  ;;  %1693 = vmatprep.mubr.f32.mxu1 %v1419_v32  ;;  %v1296_v4 = vadd.f32 1.0, %v2572_v30  ;;  %v1052_v17 = vmul.f32 0.70710677, %v3476_v61  ;;  %v913_v2 = vmul.f32 0.5, %v3438_v47 }
 0x1d3   : > { %v3549_v50 = vpop.f32.mrb[57].mxu0  ;;  %v1295_v57 = vadd.f32 1.0, %v2574_v38  ;;  %v3553_v7 = vpop.f32.mrb[57].mxu1  ;;  %1694 = vmatmul.mubr.f32.gmra.mrb[102].mxu1 %v1418_v31  ;;  %2593 = verf.f32 %v1050_v53  ;;  %v1422_v27 = vmul.f32 %v1294_v62, %v910_v34  ;;  %v912_v54 = vmul.f32 0.5, %v3433_v63 }
 0x1d4   : > { %v2576_v59 = vpop.eup %2575  ;;  %1918 = vmatprep.mubr.f32.mxu0 %v1421_v36  ;;  %2595 = verf.f32 %v1052_v17  ;;  %v1051_v1 = vmul.f32 0.70710677, %v3478_v51  ;;  %v915_v47 = vmul.f32 0.5, %v3449_v6  ;;  %v1053_v30 = vmul.f32 0.70710677, %v3481_v15 }
 0x1d5   : > { %v2578_v8 = vpop.eup %2577  ;;  %v1423_v18 = vmul.f32 %v1295_v57, %v911_v48  ;;  %v1297_v14 = vadd.f32 1.0, %v2576_v59  ;;  %1919 = vmatmul.mubr.f32.gmra.mrb[102].mxu0 %v1420_v3  ;;  %v3558_v58 = vpop.f32.mrb[58].mxu0  ;;  %v1424_v44 = vmul.f32 %v1296_v4, %v912_v54  ;;  %v1054_v63 = vmul.f32 0.70710677, %v3486_v45 }
 0x1d6   : > { %v2580_v60 = vpop.eup %2579  ;;  %v3562_v24 = vpop.f32.mrb[58].mxu1  ;;  %v1298_v37 = vadd.f32 1.0, %v2578_v8  ;;  %2597 = verf.f32 %v1051_v1  ;;  %v914_v36 = vmul.f32 0.5, %v3443_v43  ;;  %v1056_v26 = vmul.f32 0.70710677, %v3490_v35 }
 0x1d7   : > { %v3564_v55 = vpop.f32.mrb[59].mxu0  ;;  %v2582_v29 = vpop.eup %2581  ;;  %v1425_v10 = vmul.f32 %v1297_v14, %v913_v2  ;;  %1698 = vmatprep.mubr.f32.mxu1 %v1423_v18  ;;  %v1300_v62 = vadd.f32 1.0, %v2580_v60  ;;  %2599 = verf.f32 %v1053_v30  ;;  %v917_v57 = vmul.f32 0.5, %v3452_v21 }
 0x1d8   : > { %v3568_v31 = vpop.f32.mrb[59].mxu1  ;;  %v1299_v32 = vadd.f32 1.0, %v2582_v29  ;;  %1699 = vmatmul.mubr.f32.gmra.mrb[104].mxu1 %v1422_v27  ;;  %v2584_v38 = vpop.eup %2583  ;;  %2601 = verf.f32 %v1054_v63  ;;  %v1426_v43 = vmul.f32 %v1298_v37, %v914_v36  ;;  %v916_v17 = vmul.f32 0.5, %v3447_v11 }
 0x1d9   : > { %1923 = vmatprep.mubr.f32.mxu0 %v1425_v10  ;;  %v3573_v6 = vpop.f32.mrb[60].mxu0  ;;  %v2586_v3 = vpop.eup %2585  ;;  %v1301_v53 = vadd.f32 1.0, %v2584_v38  ;;  %2603 = verf.f32 %v1056_v26  ;;  %v1055_v8 = vmul.f32 0.70710677, %v3492_v33  ;;  %v919_v21 = vmul.f32 0.5, %v3463_v49 }
 0x1da   : > { %v1427_v48 = vmul.f32 %v1299_v32, %v915_v47  ;;  %1924 = vmatmul.mubr.f32.gmra.mrb[104].mxu0 %v1424_v44  ;;  %v3576_v59 = vpop.f32.mrb[60].mxu1  ;;  %v3578_v34 = vpop.f32.mrb[61].mxu0  ;;  %v1302_v60 = vadd.f32 1.0, %v2586_v3  ;;  %v1057_v27 = vmul.f32 0.70710677, %v3496_v46  ;;  %v1428_v54 = vmul.f32 %v1300_v62, %v916_v17 }
 0x1db   : > { %v2588_v4 = vpop.eup %2587  ;;  %v3582_v18 = vpop.f32.mrb[61].mxu1  ;;  %v1429_v14 = vmul.f32 %v1301_v53, %v917_v57  ;;  %2605 = verf.f32 %v1055_v8  ;;  %v1058_v29 = vmul.f32 0.70710677, %v3501_v20  ;;  %v918_v37 = vmul.f32 0.5, %v3458_v13 }
 0x1dc   : > { %v2590_v2 = vpop.eup %2589  ;;  %1703 = vmatprep.mubr.f32.mxu1 %v1427_v48  ;;  %v1304_v47 = vadd.f32 1.0, %v2588_v4  ;;  %2607 = verf.f32 %v1057_v27  ;;  %v1060_v30 = vmul.f32 0.70710677, %v3505_v12  ;;  %v921_v38 = vmul.f32 0.5, %v3467_v42 }
 0x1dd   : > { %v1303_v1 = vadd.f32 1.0, %v2590_v2  ;;  %1704 = vmatmul.mubr.f32.gmra.mrb[106].mxu1 %v1426_v43  ;;  %v3587_v11 = vpop.f32.mrb[62].mxu0  ;;  %v2592_v10 = vpop.eup %2591  ;;  %1928 = vmatprep.mubr.f32.mxu0 %v1429_v14  ;;  %2609 = verf.f32 %v1058_v29  ;;  %v1430_v13 = vmul.f32 %v1302_v60, %v918_v37  ;;  %v920_v3 = vmul.f32 0.5, %v3461_v5 }
 0x1de   : > { %v3591_v49 = vpop.f32.mrb[62].mxu1  ;;  %v3593_v44 = vpop.f32.mrb[63].mxu0  ;;  %v1305_v36 = vadd.f32 1.0, %v2592_v10  ;;  %1929 = vmatmul.mubr.f32.gmra.mrb[106].mxu0 %v1428_v54  ;;  %2611 = verf.f32 %v1060_v30  ;;  %v1059_v48 = vmul.f32 0.70710677, %v3507_v9  ;;  %v922_v53 = vmul.f32 0.5, %v3472_v56 }
 0x1df   : > { %v2594_v32 = vpop.eup %2593  ;;  %v1431_v63 = vmul.f32 %v1303_v1, %v919_v21  ;;  %v3596_v62 = vpop.f32.mrb[63].mxu1  ;;  %v1061_v43 = vmul.f32 0.70710677, %v3510_v19  ;;  %v1432_v17 = vmul.f32 %v1304_v47, %v920_v3  ;;  %v923_v8 = vmul.f32 0.5, %v3478_v51 }
 0x1e0   : > { %v2596_v26 = vpop.eup %2595  ;;  %v1433_v57 = vmul.f32 %v1305_v36, %v921_v38  ;;  %v1306_v4 = vadd.f32 1.0, %v2594_v32  ;;  %2613 = verf.f32 %v1059_v48  ;;  %v1062_v2 = vmul.f32 0.70710677, %v3516_v52 }
 0x1e1   : > { %1708 = vmatprep.mubr.f32.mxu1 %v1431_v63  ;;  %v2598_v42 = vpop.eup %2597  ;;  %v1308_v5 = vadd.f32 1.0, %v2596_v26  ;;  %2615 = verf.f32 %v1061_v43  ;;  %v1064_v21 = vmul.f32 0.70710677, %v3519_v40  ;;  %v925_v27 = vmul.f32 0.5, %v3481_v15 }
 0x1e2   : > { %1709 = vmatmul.mubr.f32.gmra.mrb[108].mxu1 %v1430_v13  ;;  %v2600_v14 = vpop.eup %2599  ;;  %v1307_v60 = vadd.f32 1.0, %v2598_v42  ;;  %1933 = vmatprep.mubr.f32.mxu0 %v1433_v57  ;;  %2617 = verf.f32 %v1062_v2  ;;  %v1063_v1 = vmul.f32 0.70710677, %v3521_v23  ;;  %v1434_v29 = vmul.f32 %v1306_v4, %v922_v53 }
 0x1e3   : > { %v2602_v56 = vpop.eup %2601  ;;  %v1309_v54 = vadd.f32 1.0, %v2600_v14  ;;  %1934 = vmatmul.mubr.f32.gmra.mrb[108].mxu0 %v1432_v17  ;;  %v924_v10 = vmul.f32 0.5, %v3476_v61  ;;  %2619 = verf.f32 %v1064_v21  ;;  %v1065_v32 = vmul.f32 0.70710677, %v3525_v0 }
 0x1e4   : > { %v2604_v51 = vpop.eup %2603  ;;  %v1435_v37 = vmul.f32 %v1307_v60, %v923_v8  ;;  %v1310_v30 = vadd.f32 1.0, %v2602_v56  ;;  %2621 = verf.f32 %v1063_v1  ;;  %v926_v15 = vmul.f32 0.5, %v3486_v45 }
 0x1e5   : > { %v1437_v47 = vmul.f32 %v1309_v54, %v925_v27  ;;  %v2606_v63 = vpop.eup %2605  ;;  %v1436_v38 = vmul.f32 %v1308_v5, %v924_v10  ;;  %v927_v36 = vmul.f32 0.5, %v3492_v33  ;;  %v1066_v26 = vmul.f32 0.70710677, %v3529_v39 }
 0x1e6   : > { %1713 = vmatprep.mubr.f32.mxu1 %v1435_v37  ;;  %v2608_v13 = vpop.eup %2607  ;;  %v1312_v3 = vadd.f32 1.0, %v2604_v51  ;;  %v1311_v48 = vadd.f32 1.0, %v2606_v63  ;;  %2623 = verf.f32 %v1065_v32  ;;  %v1068_v61 = vmul.f32 0.70710677, %v3534_v25 }
 0x1e7   : > { %1938 = vmatprep.mubr.f32.mxu0 %v1437_v47  ;;  %1714 = vmatmul.mubr.f32.gmra.mrb[110].mxu1 %v1434_v29  ;;  %v2610_v57 = vpop.eup %2609  ;;  %v929_v53 = vmul.f32 0.5, %v3496_v46  ;;  %v1313_v4 = vadd.f32 1.0, %v2608_v13  ;;  %2625 = verf.f32 %v1066_v26  ;;  %v1067_v45 = vmul.f32 0.70710677, %v3536_v41 }
 0x1e8   : > { %1939 = vmatmul.mubr.f32.gmra.mrb[110].mxu0 %v1436_v38  ;;  %v2612_v33 = vpop.eup %2611  ;;  %v1438_v43 = vmul.f32 %v1310_v30, %v926_v15  ;;  %v928_v42 = vmul.f32 0.5, %v3490_v35  ;;  %v1439_v17 = vmul.f32 %v1311_v48, %v927_v36  ;;  %2627 = verf.f32 %v1068_v61 }
 0x1e9   : > { %v1441_v8 = vmul.f32 %v1313_v4, %v929_v53  ;;  %v1314_v2 = vadd.f32 1.0, %v2610_v57  ;;  %2629 = verf.f32 %v1067_v45  ;;  %v1069_v14 = vmul.f32 0.70710677, %v3539_v28 }
 0x1ea   : > { %v2614_v5 = vpop.eup %2613  ;;  %v1440_v60 = vmul.f32 %v1312_v3, %v928_v42  ;;  %v930_v46 = vmul.f32 0.5, %v3501_v20  ;;  %v931_v21 = vmul.f32 0.5, %v3507_v9  ;;  %v1070_v56 = vmul.f32 0.70710677, %v3544_v22  ;;  %1718 = vmatprep.mubr.f32.mxu1 %v1439_v17 }
 0x1eb   : > { %v2616_v27 = vpop.eup %2615  ;;  %v1316_v54 = vadd.f32 1.0, %v2612_v33  ;;  %v1315_v1 = vadd.f32 1.0, %v2614_v5  ;;  %2631 = verf.f32 %v1069_v14  ;;  %v1072_v35 = vmul.f32 0.70710677, %v3547_v16  ;;  %1943 = vmatprep.mubr.f32.mxu0 %v1441_v8  ;;  %1719 = vmatmul.mubr.f32.gmra.mrb[112].mxu1 %v1438_v43 }
 0x1ec   : > { %v2618_v51 = vpop.eup %2617  ;;  %v933_v29 = vmul.f32 0.5, %v3510_v19  ;;  %v1317_v10 = vadd.f32 1.0, %v2616_v27  ;;  %2633 = verf.f32 %v1070_v56  ;;  %v1071_v20 = vmul.f32 0.70710677, %v3549_v50  ;;  %1944 = vmatmul.mubr.f32.gmra.mrb[112].mxu0 %v1440_v60 }
 0x1ed   : > { %v2620_v9 = vpop.eup %2619  ;;  %v1442_v37 = vmul.f32 %v1314_v2, %v930_v46  ;;  %v932_v47 = vmul.f32 0.5, %v3505_v12  ;;  %v1443_v30 = vmul.f32 %v1315_v1, %v931_v21  ;;  %2635 = verf.f32 %v1072_v35 }
 0x1ee   : > { %v2622_v32 = vpop.eup %2621  ;;  %v1445_v63 = vmul.f32 %v1317_v10, %v933_v29  ;;  %v1318_v38 = vadd.f32 1.0, %v2618_v51  ;;  %2637 = verf.f32 %v1071_v20  ;;  %v1073_v15 = vmul.f32 0.70710677, %v3553_v7 }
 0x1ef   : > { %v1444_v36 = vmul.f32 %v1316_v54, %v932_v47  ;;  %v935_v19 = vmul.f32 0.5, %v3521_v23  ;;  %v1319_v26 = vadd.f32 1.0, %v2622_v32  ;;  %v1074_v13 = vmul.f32 0.70710677, %v3558_v58  ;;  %1723 = vmatprep.mubr.f32.mxu1 %v1443_v30 }
 0x1f0   : > { %v2624_v3 = vpop.eup %2623  ;;  %v934_v48 = vmul.f32 0.5, %v3516_v52  ;;  %v1320_v61 = vadd.f32 1.0, %v2620_v9  ;;  %2639 = verf.f32 %v1073_v15  ;;  %v1076_v12 = vmul.f32 0.70710677, %v3562_v24  ;;  %1948 = vmatprep.mubr.f32.mxu0 %v1445_v63  ;;  %1724 = vmatmul.mubr.f32.gmra.mrb[114].mxu1 %v1442_v37 }
 0x1f1   : > { %v2626_v57 = vpop.eup %2625  ;;  %v1447_v53 = vmul.f32 %v1319_v26, %v935_v19  ;;  %v937_v4 = vmul.f32 0.5, %v3525_v0  ;;  %v1321_v45 = vadd.f32 1.0, %v2624_v3  ;;  %2641 = verf.f32 %v1074_v13  ;;  %1949 = vmatmul.mubr.f32.gmra.mrb[114].mxu0 %v1444_v36 }
 0x1f2   : > { %v2628_v23 = vpop.eup %2627  ;;  %v1446_v33 = vmul.f32 %v1318_v38, %v934_v48  ;;  %v936_v43 = vmul.f32 0.5, %v3519_v40  ;;  %2643 = verf.f32 %v1076_v12  ;;  %v1075_v52 = vmul.f32 0.70710677, %v3564_v55 }
 0x1f3   : > { %v2630_v42 = vpop.eup %2629  ;;  %v1449_v17 = vmul.f32 %v1321_v45, %v937_v4  ;;  %v1322_v8 = vadd.f32 1.0, %v2626_v57  ;;  %v939_v2 = vmul.f32 0.5, %v3536_v41  ;;  %v1077_v14 = vmul.f32 0.70710677, %v3568_v31  ;;  %1728 = vmatprep.mubr.f32.mxu1 %v1447_v53 }
 0x1f4   : > { %v1448_v5 = vmul.f32 %v1320_v61, %v936_v43  ;;  %v1323_v0 = vadd.f32 1.0, %v2630_v42  ;;  %2645 = verf.f32 %v1075_v52  ;;  %v1078_v60 = vmul.f32 0.70710677, %v3573_v6  ;;  %1729 = vmatmul.mubr.f32.gmra.mrb[116].mxu1 %v1446_v33 }
 0x1f5   : > { %v2632_v46 = vpop.eup %2631  ;;  %v938_v40 = vmul.f32 0.5, %v3529_v39  ;;  %v1324_v21 = vadd.f32 1.0, %v2628_v23  ;;  %2647 = verf.f32 %v1077_v14  ;;  %v1080_v56 = vmul.f32 0.70710677, %v3576_v59  ;;  %1953 = vmatprep.mubr.f32.mxu0 %v1449_v17 }
 0x1f6   : > { %v2634_v27 = vpop.eup %2633  ;;  %v1451_v54 = vmul.f32 %v1323_v0, %v939_v2  ;;  %v941_v41 = vmul.f32 0.5, %v3539_v28  ;;  %v1325_v1 = vadd.f32 1.0, %v2632_v46  ;;  %2649 = verf.f32 %v1078_v60  ;;  %1954 = vmatmul.mubr.f32.gmra.mrb[116].mxu0 %v1448_v5 }
 0x1f7   : > { %v2636_v35 = vpop.eup %2635  ;;  %v1450_v51 = vmul.f32 %v1322_v8, %v938_v40  ;;  %v940_v29 = vmul.f32 0.5, %v3534_v25  ;;  %2651 = verf.f32 %v1080_v56  ;;  %v1079_v10 = vmul.f32 0.70710677, %v3578_v34 }
 0x1f8   : > { %v2638_v39 = vpop.eup %2637  ;;  %v1453_v20 = vmul.f32 %v1325_v1, %v941_v41  ;;  %v1326_v9 = vadd.f32 1.0, %v2634_v27  ;;  %v943_v37 = vmul.f32 0.5, %v3549_v50  ;;  %v1081_v47 = vmul.f32 0.70710677, %v3582_v18  ;;  %1733 = vmatprep.mubr.f32.mxu1 %v1451_v54 }
 0x1f9   : > { %v1452_v30 = vmul.f32 %v1324_v21, %v940_v29  ;;  %v1327_v28 = vadd.f32 1.0, %v2638_v39  ;;  %2653 = verf.f32 %v1079_v10  ;;  %v1082_v32 = vmul.f32 0.70710677, %v3587_v11  ;;  %1734 = vmatmul.mubr.f32.gmra.mrb[118].mxu1 %v1450_v51 }
 0x1fa   : > { %v2640_v63 = vpop.eup %2639  ;;  %v942_v25 = vmul.f32 0.5, %v3544_v22  ;;  %v1328_v38 = vadd.f32 1.0, %v2636_v35  ;;  %2655 = verf.f32 %v1081_v47  ;;  %v1084_v15 = vmul.f32 0.70710677, %v3591_v49  ;;  %1958 = vmatprep.mubr.f32.mxu0 %v1453_v20 }
 0x1fb   : > { %v2642_v36 = vpop.eup %2641  ;;  %v1455_v19 = vmul.f32 %v1327_v28, %v943_v37  ;;  %v945_v50 = vmul.f32 0.5, %v3553_v7  ;;  %v1329_v26 = vadd.f32 1.0, %v2640_v63  ;;  %2657 = verf.f32 %v1082_v32  ;;  %1959 = vmatmul.mubr.f32.gmra.mrb[118].mxu0 %v1452_v30 }
 0x1fc   : > { %v2644_v13 = vpop.eup %2643  ;;  %v1454_v3 = vmul.f32 %v1326_v9, %v942_v25  ;;  %v944_v48 = vmul.f32 0.5, %v3547_v16  ;;  %2659 = verf.f32 %v1084_v15  ;;  %v1083_v61 = vmul.f32 0.70710677, %v3593_v44 }
 0x1fd   : > { %v1457_v22 = vmul.f32 %v1329_v26, %v945_v50  ;;  %v1085_v12 = vmul.f32 0.70710677, %v3596_v62  ;;  %1738 = vmatprep.mubr.f32.mxu1 %v1455_v19  ;;  %v1330_v4 = vadd.f32 1.0, %v2642_v36  ;;  %v1332_v45 = vadd.f32 1.0, %v2644_v13 }
 0x1fe   : > { %v2646_v57 = vpop.eup %2645  ;;  %v1456_v53 = vmul.f32 %v1328_v38, %v944_v48  ;;  %2661 = verf.f32 %v1083_v61  ;;  %1739 = vmatmul.mubr.f32.gmra.mrb[120].mxu1 %v1454_v3  ;;  %v947_v23 = vmul.f32 0.5, %v3564_v55  ;;  %v946_v43 = vmul.f32 0.5, %v3558_v58 }
 0x1ff   : > { %v2648_v7 = vpop.eup %2647  ;;  %v1331_v33 = vadd.f32 1.0, %v2646_v57  ;;  %2663 = verf.f32 %v1085_v12  ;;  %1963 = vmatprep.mubr.f32.mxu0 %v1457_v22  ;;  %v949_v52 = vmul.f32 0.5, %v3568_v31  ;;  %v948_v8 = vmul.f32 0.5, %v3562_v24 }
 0x200   : > { %v2650_v16 = vpop.eup %2649  ;;  %v1333_v42 = vadd.f32 1.0, %v2648_v7  ;;  %1964 = vmatmul.mubr.f32.gmra.mrb[120].mxu0 %v1456_v53  ;;  %v1458_v14 = vmul.f32 %v1330_v4, %v946_v43  ;;  %v951_v21 = vmul.f32 0.5, %v3578_v34  ;;  %v950_v31 = vmul.f32 0.5, %v3573_v6 }
 0x201   : > { %v2652_v17 = vpop.eup %2651  ;;  %v1459_v2 = vmul.f32 %v1331_v33, %v947_v23  ;;  %v1460_v60 = vmul.f32 %v1332_v45, %v948_v8  ;;  %v1334_v46 = vadd.f32 1.0, %v2650_v16  ;;  %v953_v27 = vmul.f32 0.5, %v3582_v18 }
 0x202   : > { %v1461_v5 = vmul.f32 %v1333_v42, %v949_v52  ;;  %v1336_v40 = vadd.f32 1.0, %v2652_v17  ;;  %v952_v41 = vmul.f32 0.5, %v3576_v59  ;;  %v955_v9 = vmul.f32 0.5, %v3593_v44 }
 0x203   : > { %v2654_v0 = vpop.eup %2653  ;;  %1743 = vmatprep.mubr.f32.mxu1 %v1459_v2  ;;  %v1462_v35 = vmul.f32 %v1334_v46, %v950_v31  ;;  %v954_v6 = vmul.f32 0.5, %v3587_v11  ;;  %v957_v18 = vmul.f32 0.5, %v3596_v62  ;;  %v956_v59 = vmul.f32 0.5, %v3591_v49 }
 0x204   : > { %v2656_v55 = vpop.eup %2655  ;;  %v1335_v56 = vadd.f32 1.0, %v2654_v0  ;;  %1968 = vmatprep.mubr.f32.mxu0 %v1461_v5  ;;  %1744 = vmatmul.mubr.f32.gmra.mrb[122].mxu1 %v1458_v14  ;;  %v1464_v10 = vmul.f32 %v1336_v40, %v952_v41 }
 0x205   : > { %v2658_v58 = vpop.eup %2657  ;;  %v1337_v24 = vadd.f32 1.0, %v2656_v55  ;;  %1969 = vmatmul.mubr.f32.gmra.mrb[122].mxu0 %v1460_v60 }
 0x206   : > { %v2660_v54 = vpop.eup %2659  ;;  %v1463_v1 = vmul.f32 %v1335_v56, %v951_v21  ;;  %v1338_v39 = vadd.f32 1.0, %v2658_v58 }
 0x207   : > { %v1465_v51 = vmul.f32 %v1337_v24, %v953_v27  ;;  %v1340_v20 = vadd.f32 1.0, %v2660_v54 }
 0x208   : > { %v2662_v29 = vpop.eup %2661  ;;  %1748 = vmatprep.mubr.f32.mxu1 %v1463_v1  ;;  %v1466_v28 = vmul.f32 %v1338_v39, %v954_v6 }
 0x209   : > { %v2664_v34 = vpop.eup %2663  ;;  %v1339_v37 = vadd.f32 1.0, %v2662_v29  ;;  %1973 = vmatprep.mubr.f32.mxu0 %v1465_v51  ;;  %1749 = vmatmul.mubr.f32.gmra.mrb[124].mxu1 %v1462_v35  ;;  %v1468_v63 = vmul.f32 %v1340_v20, %v956_v59 }
 0x20a   : > { %v1341_v47 = vadd.f32 1.0, %v2664_v34  ;;  %1974 = vmatmul.mubr.f32.gmra.mrb[124].mxu0 %v1464_v10 }
 0x20b   : > { %v1467_v30 = vmul.f32 %v1339_v37, %v955_v9 }
 0x20c   : > { %v1469_v32 = vmul.f32 %v1341_v47, %v957_v18 }
 0x20d   : > { %1753 = vmatprep.mubr.f32.mxu1 %v1467_v30 }
 0x20e   : > { %1978 = vmatprep.mubr.f32.mxu0 %v1469_v32  ;;  %1754 = vmatmul.mubr.f32.gmra.mrb[126].mxu1 %v1466_v28 }
 0x20f   : > { %1979 = vmatmul.mubr.f32.gmra.mrb[126].mxu0 %v1468_v63 }
 0x249   : > { %v1600_v44 = vpop.f32.mrb[64].mxu1 }
 0x24a   : > { %v1825_v25 = vpop.f32.mrb[64].mxu0  ;;  %v1602_v38 = vpop.f32.mrb[65].mxu1 }
 0x24b   : > { %v1826_v15 = vadd.f32 %v1825_v25, %v1600_v44  ;;  %v1827_v11 = vpop.f32.mrb[65].mxu0 }
 0x24d   : > { %1984 = vst [vmem:[%s3663_s18] sm:$0xff] %v1826_v15  ;;  %v1605_v49 = vpop.f32.mrb[66].mxu1 }
 0x24e   : > { %v1830_v62 = vpop.f32.mrb[66].mxu0  ;;  %v1607_v36 = vpop.f32.mrb[67].mxu1 }
 0x24f   : > { %v1831_v19 = vadd.f32 %v1830_v62, %v1605_v49  ;;  %v1832_v50 = vpop.f32.mrb[67].mxu0 }
 0x251   : > { %1985 = vst [vmem:[%s3663_s18 + $0x8] sm:$0xff] %v1831_v19  ;;  %v1610_v26 = vpop.f32.mrb[68].mxu1 }
 0x252   : > { %v1835_v13 = vpop.f32.mrb[68].mxu0  ;;  %v1612_v3 = vpop.f32.mrb[69].mxu1 }
 0x253   : > { %v1836_v48 = vadd.f32 %v1835_v13, %v1610_v26  ;;  %v1837_v61 = vpop.f32.mrb[69].mxu0 }
 0x255   : > { %1986 = vst [vmem:[%s3663_s18 + $0x10] sm:$0xff] %v1836_v48  ;;  %v1615_v22 = vpop.f32.mrb[70].mxu1 }
 0x256   : > { %v1617_v12 = vpop.f32.mrb[71].mxu1  ;;  %v1840_v57 = vpop.f32.mrb[70].mxu0 }
 0x257   : > { %v1841_v53 = vadd.f32 %v1840_v57, %v1615_v22  ;;  %v1842_v4 = vpop.f32.mrb[71].mxu0 }
 0x259   : > { %1987 = vst [vmem:[%s3663_s18 + $0x18] sm:$0xff] %v1841_v53 }
 0x25a   : > { %v1620_v7 = vpop.f32.mrb[72].mxu1 }
 0x25b   : > { %v1622_v45 = vpop.f32.mrb[73].mxu1 }
 0x25c   : > { %v1845_v23 = vpop.f32.mrb[72].mxu0 }
 0x25d   : > { %v1846_v33 = vadd.f32 %v1845_v23, %v1620_v7  ;;  %v1847_v16 = vpop.f32.mrb[73].mxu0 }
 0x25f   : > { %1988 = vst [vmem:[%s3663_s18 + $0x20] sm:$0xff] %v1846_v33 }
 0x260   : > { %v1625_v43 = vpop.f32.mrb[74].mxu1 }
 0x261   : > { %v1627_v52 = vpop.f32.mrb[75].mxu1  ;;  %v1850_v42 = vpop.f32.mrb[74].mxu0 }
 0x262   : > { %v1851_v17 = vadd.f32 %v1850_v42, %v1625_v43  ;;  %v1852_v8 = vpop.f32.mrb[75].mxu0 }
 0x264   : > { %1989 = vst [vmem:[%s3663_s18 + $0x28] sm:$0xff] %v1851_v17 }
 0x265   : > { %v1630_v2 = vpop.f32.mrb[76].mxu1 }
 0x266   : > { %v1855_v14 = vpop.f32.mrb[76].mxu0  ;;  %v1632_v5 = vpop.f32.mrb[77].mxu1 }
 0x267   : > { %v1856_v0 = vadd.f32 %v1855_v14, %v1630_v2  ;;  %v1857_v60 = vpop.f32.mrb[77].mxu0 }
 0x269   : > { %1990 = vst [vmem:[%s3663_s18 + $0x30] sm:$0xff] %v1856_v0 }
 0x26a   : > { %v1635_v46 = vpop.f32.mrb[78].mxu1 }
 0x26b   : > { %v1637_v40 = vpop.f32.mrb[79].mxu1 }
 0x26c   : > { %v1860_v55 = vpop.f32.mrb[78].mxu0 }
 0x26d   : > { %v1861_v21 = vadd.f32 %v1860_v55, %v1635_v46  ;;  %v1862_v56 = vpop.f32.mrb[79].mxu0 }
 0x26f   : > { %1991 = vst [vmem:[%s3663_s18 + $0x38] sm:$0xff] %v1861_v21  ;;  %v1640_v58 = vpop.f32.mrb[80].mxu1 }
 0x270   : > { %v1865_v31 = vpop.f32.mrb[80].mxu0  ;;  %v1642_v27 = vpop.f32.mrb[81].mxu1 }
 0x271   : > { %v1866_v24 = vadd.f32 %v1865_v31, %v1640_v58  ;;  %v1867_v54 = vpop.f32.mrb[81].mxu0 }
 0x273   : > { %1992 = vst [vmem:[%s3663_s18 + $0x40] sm:$0xff] %v1866_v24 }
 0x274   : > { %v1645_v41 = vpop.f32.mrb[82].mxu1 }
 0x275   : > { %v1647_v1 = vpop.f32.mrb[83].mxu1  ;;  %v1870_v35 = vpop.f32.mrb[82].mxu0 }
 0x276   : > { %v1871_v51 = vadd.f32 %v1870_v35, %v1645_v41  ;;  %v1872_v29 = vpop.f32.mrb[83].mxu0 }
 0x278   : > { %1993 = vst [vmem:[%s3663_s18 + $0x48] sm:$0xff] %v1871_v51 }
 0x279   : > { %v1650_v10 = vpop.f32.mrb[84].mxu1 }
 0x27a   : > { %v1652_v39 = vpop.f32.mrb[85].mxu1  ;;  %v1875_v34 = vpop.f32.mrb[84].mxu0 }
 0x27b   : > { %v1876_v20 = vadd.f32 %v1875_v34, %v1650_v10  ;;  %v1877_v9 = vpop.f32.mrb[85].mxu0 }
 0x27d   : > { %1994 = vst [vmem:[%s3663_s18 + $0x50] sm:$0xff] %v1876_v20 }
 0x27e   : > { %v1655_v37 = vpop.f32.mrb[86].mxu1 }
 0x27f   : > { %v1657_v18 = vpop.f32.mrb[87].mxu1 }
 0x280   : > { %v1880_v6 = vpop.f32.mrb[86].mxu0 }
 0x281   : > { %v1881_v47 = vadd.f32 %v1880_v6, %v1655_v37  ;;  %v1882_v59 = vpop.f32.mrb[87].mxu0 }
 0x283   : > { %1995 = vst [vmem:[%s3663_s18 + $0x58] sm:$0xff] %v1881_v47 }
 0x284   : > { %v1660_v30 = vpop.f32.mrb[88].mxu1 }
 0x285   : > { %v1885_v28 = vpop.f32.mrb[88].mxu0  ;;  %v1662_v32 = vpop.f32.mrb[89].mxu1 }
 0x286   : > { %v1886_v63 = vadd.f32 %v1885_v28, %v1660_v30  ;;  %v1887_v44 = vpop.f32.mrb[89].mxu0 }
 0x288   : > { %1996 = vst [vmem:[%s3663_s18 + $0x60] sm:$0xff] %v1886_v63 }
 0x289   : > { %v1665_v25 = vpop.f32.mrb[90].mxu1 }
 0x28a   : > { %v1890_v38 = vpop.f32.mrb[90].mxu0  ;;  %v1667_v15 = vpop.f32.mrb[91].mxu1 }
 0x28b   : > { %v1891_v11 = vadd.f32 %v1890_v38, %v1665_v25  ;;  %v1892_v49 = vpop.f32.mrb[91].mxu0 }
 0x28d   : > { %1997 = vst [vmem:[%s3663_s18 + $0x68] sm:$0xff] %v1891_v11  ;;  %v1670_v62 = vpop.f32.mrb[92].mxu1 }
 0x28e   : > { %v1672_v36 = vpop.f32.mrb[93].mxu1  ;;  %v1895_v19 = vpop.f32.mrb[92].mxu0 }
 0x28f   : > { %v1896_v50 = vadd.f32 %v1895_v19, %v1670_v62  ;;  %v1897_v26 = vpop.f32.mrb[93].mxu0 }
 0x291   : > { %1998 = vst [vmem:[%s3663_s18 + $0x70] sm:$0xff] %v1896_v50 }
 0x292   : > { %v1675_v13 = vpop.f32.mrb[94].mxu1 }
 0x293   : > { %v1677_v3 = vpop.f32.mrb[95].mxu1 }
 0x294   : > { %v1900_v48 = vpop.f32.mrb[94].mxu0 }
 0x295   : > { %v1901_v61 = vadd.f32 %v1900_v48, %v1675_v13  ;;  %v1902_v22 = vpop.f32.mrb[95].mxu0 }
 0x297   : > { %1999 = vst [vmem:[%s3663_s18 + $0x78] sm:$0xff] %v1901_v61  ;;  %v1680_v12 = vpop.f32.mrb[96].mxu1 }
 0x298   : > { %v1682_v57 = vpop.f32.mrb[97].mxu1 }
 0x299   : > { %v1905_v53 = vpop.f32.mrb[96].mxu0 }
 0x29a   : > { %v1906_v4 = vadd.f32 %v1905_v53, %v1680_v12  ;;  %v1907_v7 = vpop.f32.mrb[97].mxu0 }
 0x29c   : > { %2000 = vst [vmem:[%s3663_s18 + $0x80] sm:$0xff] %v1906_v4 }
 0x29d   : > { %v1685_v45 = vpop.f32.mrb[98].mxu1 }
 0x29e   : > { %v1910_v23 = vpop.f32.mrb[98].mxu0  ;;  %v1687_v33 = vpop.f32.mrb[99].mxu1 }
 0x29f   : > { %v1911_v16 = vadd.f32 %v1910_v23, %v1685_v45  ;;  %v1912_v43 = vpop.f32.mrb[99].mxu0 }
 0x2a1   : > { %2001 = vst [vmem:[%s3663_s18 + $0x88] sm:$0xff] %v1911_v16  ;;  %v1690_v52 = vpop.f32.mrb[100].mxu1 }
 0x2a2   : > { %v1915_v42 = vpop.f32.mrb[100].mxu0  ;;  %v1692_v17 = vpop.f32.mrb[101].mxu1 }
 0x2a3   : > { %v1916_v8 = vadd.f32 %v1915_v42, %v1690_v52  ;;  %v1917_v2 = vpop.f32.mrb[101].mxu0 }
 0x2a5   : > { %2002 = vst [vmem:[%s3663_s18 + $0x90] sm:$0xff] %v1916_v8 }
 0x2a6   : > { %v1695_v14 = vpop.f32.mrb[102].mxu1 }
 0x2a7   : > { %v1697_v0 = vpop.f32.mrb[103].mxu1 }
 0x2a8   : > { %v1920_v5 = vpop.f32.mrb[102].mxu0 }
 0x2a9   : > { %v1921_v60 = vadd.f32 %v1920_v5, %v1695_v14  ;;  %v1922_v46 = vpop.f32.mrb[103].mxu0 }
 0x2ab   : > { %2003 = vst [vmem:[%s3663_s18 + $0x98] sm:$0xff] %v1921_v60  ;;  %v1700_v55 = vpop.f32.mrb[104].mxu1 }
 0x2ac   : > { %v1702_v40 = vpop.f32.mrb[105].mxu1 }
 0x2ad   : > { %v1925_v21 = vpop.f32.mrb[104].mxu0 }
 0x2ae   : > { %v1926_v56 = vadd.f32 %v1925_v21, %v1700_v55  ;;  %v1927_v58 = vpop.f32.mrb[105].mxu0 }
 0x2b0   : > { %2004 = vst [vmem:[%s3663_s18 + $0xa0] sm:$0xff] %v1926_v56  ;;  %v1705_v31 = vpop.f32.mrb[106].mxu1 }
 0x2b1   : > { %v1707_v27 = vpop.f32.mrb[107].mxu1  ;;  %v1930_v24 = vpop.f32.mrb[106].mxu0 }
 0x2b2   : > { %v1931_v54 = vadd.f32 %v1930_v24, %v1705_v31  ;;  %v1932_v41 = vpop.f32.mrb[107].mxu0 }
 0x2b4   : > { %2005 = vst [vmem:[%s3663_s18 + $0xa8] sm:$0xff] %v1931_v54 }
 0x2b5   : > { %v1710_v1 = vpop.f32.mrb[108].mxu1 }
 0x2b6   : > { %v1712_v35 = vpop.f32.mrb[109].mxu1  ;;  %v1935_v51 = vpop.f32.mrb[108].mxu0 }
 0x2b7   : > { %v1936_v29 = vadd.f32 %v1935_v51, %v1710_v1  ;;  %v1937_v10 = vpop.f32.mrb[109].mxu0 }
 0x2b9   : > { %2006 = vst [vmem:[%s3663_s18 + $0xb0] sm:$0xff] %v1936_v29 }
 0x2ba   : > { %v1715_v39 = vpop.f32.mrb[110].mxu1 }
 0x2bb   : > { %v1940_v34 = vpop.f32.mrb[110].mxu0  ;;  %v1717_v20 = vpop.f32.mrb[111].mxu1 }
 0x2bc   : > { %v1941_v9 = vadd.f32 %v1940_v34, %v1715_v39  ;;  %v1942_v37 = vpop.f32.mrb[111].mxu0 }
 0x2be   : > { %2007 = vst [vmem:[%s3663_s18 + $0xb8] sm:$0xff] %v1941_v9  ;;  %v1720_v6 = vpop.f32.mrb[112].mxu1 }
 0x2bf   : > { %v1945_v18 = vpop.f32.mrb[112].mxu0  ;;  %v1722_v47 = vpop.f32.mrb[113].mxu1 }
 0x2c0   : > { %v1946_v59 = vadd.f32 %v1945_v18, %v1720_v6  ;;  %v1947_v30 = vpop.f32.mrb[113].mxu0 }
 0x2c2   : > { %2008 = vst [vmem:[%s3663_s18 + $0xc0] sm:$0xff] %v1946_v59 }
 0x2c3   : > { %v1725_v28 = vpop.f32.mrb[114].mxu1 }
 0x2c4   : > { %v1950_v32 = vpop.f32.mrb[114].mxu0  ;;  %v1727_v63 = vpop.f32.mrb[115].mxu1 }
 0x2c5   : > { %v1951_v44 = vadd.f32 %v1950_v32, %v1725_v28  ;;  %v1952_v25 = vpop.f32.mrb[115].mxu0 }
 0x2c7   : > { %2009 = vst [vmem:[%s3663_s18 + $0xc8] sm:$0xff] %v1951_v44  ;;  %v1730_v38 = vpop.f32.mrb[116].mxu1 }
 0x2c8   : > { %v1732_v15 = vpop.f32.mrb[117].mxu1 }
 0x2c9   : > { %v1955_v11 = vpop.f32.mrb[116].mxu0 }
 0x2ca   : > { %v1956_v49 = vadd.f32 %v1955_v11, %v1730_v38  ;;  %v1957_v62 = vpop.f32.mrb[117].mxu0 }
 0x2cc   : > { %2010 = vst [vmem:[%s3663_s18 + $0xd0] sm:$0xff] %v1956_v49  ;;  %v1735_v36 = vpop.f32.mrb[118].mxu1 }
 0x2cd   : > { %v1737_v19 = vpop.f32.mrb[119].mxu1 }
 0x2ce   : > { %v1960_v50 = vpop.f32.mrb[118].mxu0 }
 0x2cf   : > { %v1961_v26 = vadd.f32 %v1960_v50, %v1735_v36  ;;  %v1962_v13 = vpop.f32.mrb[119].mxu0 }
 0x2d1   : > { %2011 = vst [vmem:[%s3663_s18 + $0xd8] sm:$0xff] %v1961_v26  ;;  %v1740_v3 = vpop.f32.mrb[120].mxu1 }
 0x2d2   : > { %v1742_v48 = vpop.f32.mrb[121].mxu1 }
 0x2d3   : > { %v1965_v61 = vpop.f32.mrb[120].mxu0 }
 0x2d4   : > { %v1966_v22 = vadd.f32 %v1965_v61, %v1740_v3  ;;  %v1967_v12 = vpop.f32.mrb[121].mxu0 }
 0x2d6   : > { %2012 = vst [vmem:[%s3663_s18 + $0xe0] sm:$0xff] %v1966_v22 }
 0x2d7   : > { %v1745_v57 = vpop.f32.mrb[122].mxu1 }
 0x2d8   : > { %v1970_v53 = vpop.f32.mrb[122].mxu0  ;;  %v1747_v4 = vpop.f32.mrb[123].mxu1 }
 0x2d9   : > { %v1971_v7 = vadd.f32 %v1970_v53, %v1745_v57  ;;  %v1972_v45 = vpop.f32.mrb[123].mxu0 }
 0x2db   : > { %2013 = vst [vmem:[%s3663_s18 + $0xe8] sm:$0xff] %v1971_v7 }
 0x2dc   : > { %v1750_v23 = vpop.f32.mrb[124].mxu1 }
 0x2dd   : > { %v1975_v33 = vpop.f32.mrb[124].mxu0  ;;  %v1752_v16 = vpop.f32.mrb[125].mxu1 }
 0x2de   : > { %v1976_v43 = vadd.f32 %v1975_v33, %v1750_v23  ;;  %v1977_v52 = vpop.f32.mrb[125].mxu0 }
 0x2e0   : > { %2014 = vst [vmem:[%s3663_s18 + $0xf0] sm:$0xff] %v1976_v43 }
 0x2e1   : > { %v1755_v42 = vpop.f32.mrb[126].mxu1 }
 0x2e2   : > { %v1980_v17 = vpop.f32.mrb[126].mxu0  ;;  %v1757_v8 = vpop.f32.mrb[127].mxu1 }
 0x2e3   : > { %v1981_v2 = vadd.f32 %v1980_v17, %v1755_v42  ;;  %v1982_v14 = vpop.f32.mrb[127].mxu0 }
 0x2e5   : > { %2015 = vst [vmem:[%s3663_s18 + $0xf8] sm:$0xff] %v1981_v2 }
 0x2e6   : > { %2764 = shalt.err (!%p2761_p2)
}
 0x2e7   : > { %s2765_s10 = scalar_lea.hbm %s3701_s27, 4096  ;;  %s2769_s26 = scalar_lea.hbm %s3751_s3, 8192 }
 0x2e8   : > { %p2766_p13 = scmp.ne.s32.totalorder %s3701_s27, %s2765_s10  ;;  %p2770_p4 = scmp.lt.u32.totalorder %s3701_s27, %s3751_s3 }
 0x2e9   : > { %p2771_p7 = scmp.lt.u32.totalorder %s2769_s26, %s2765_s10  ;;  %p2773_p11 = scmp.lt.u32.totalorder %s2765_s10, %s3701_s27 }
 0x2ea   : > { %p2767_p6 = pnand %p2766_p13, %p3765_p0 }
 0x2eb   : > { %p2772_p8 = por %p2771_p7, %p2770_p4 }
 0x2ec   : > { %p2768_p10 = pneg %p2767_p6 }
 0x2ed   : > { %p2774_p1 = por %p2773_p11, %p2772_p8 }
 0x2ef   : > { %p2775_p3 = pnand %p2774_p1, %p2768_p10 }
 0x2f1   : > { %2778 = shalt.err (!%p2775_p3)
}
 0x2f2   : > { %s2833_s28 = smov 128   ;;  %s2834_s18 = smov 8  }
 0x2f3   : > { %2344 = dma.vmem_to_hbm [thread:$0]  (%p3765_p0), %s3703_s29, 4096, %s3701_s27, %s2017_s22, %s2833_s28, %s2833_s28, %s2834_s18  }
 0x2f4 PF: > { %s2045_s20 = sand.u32 1, %s2809_s12   ;;  %p3766_p5 = scmp.ne.s32.totalorder %s3756_s19, 0 }
 0x2f5   : > { %p3767_p9 = scmp.ge.s32.totalorder %s2821_s15, 2  ;;  %s2046_s30 = scalar_lea.sflag [#allocation4], %s2045_s20 }
 0x2f7   : > { %p2358_p12 = pnand %p3767_p9, %p3766_p5 }
 0x2f9   : > { %2804 = dma.done.wait (!%p2358_p12), %s2046_s30, 4096  }
 0x2fa   : > { %2806 = vsyncadd (!%p2358_p12), %s2046_s30, 4294963200  ;;  %p17_p2 = scmp.ge.s32.totalorder %s2968_s6, 4   ;;  %s3768_s12 = smov %s2813_s13 }
 0x2fb   : > { %s3769_s13 = smov %s2817_s14  ;;  %s3770_s14 = smov %s2977_s9 }
 0x2fc   : > { %s3771_s15 = smov %s2968_s6  ;;  %19 = sbr.rel (!%p17_p2) target bundleno = 6 (0x6), region = 85 }
 0x303   :  { %2051 = vsyncpa [#allocation3], 1 }
 0x304   :  { %2053 = vsyncpa [#allocation3 + $0x1], 1 }
 0x305   :  { %2054 = vsyncpa [#allocation6], 1 }
 0x306   :  { %2055 = vsyncpa [#allocation4], 1 }
 0x307   :  { %2057 = vsyncpa [#allocation4 + $0x1], 1 }

</bundles_post_ra>
